<compile_context>
chip_gen: v7x
topology: tpu7x:2x2x1
jax: 0.10.0
libtpu: 0.0.40
codegen_flags: <defaults>
</compile_context>

<pallas_src>
import math
from functools import partial

import numpy as np
import jax
import jax.numpy as jnp
from jax.experimental import pallas as pl
from jax.experimental.pallas import tpu as pltpu

LORA_RANK = 4
LORA_SCALE = 1.0               # alpha / r
COMPUTE_DTYPE = jnp.bfloat16   # MXU operand dtype (accumulation is always f32)


def _hw_defaults():
    """Per-generation (TM, TN, TK, vmem_limit_bytes) tile preferences."""
    vmem = None
    try:
        get_info = getattr(pltpu, "get_tpu_info", None)
        if get_info is not None:
            vmem = int(get_info().vmem_capacity_bytes)
    except Exception:
        vmem = None
    if vmem is not None and vmem >= (100 << 20):
        # v5e / v6e: 128 MiB VMEM per TensorCore -> bigger tiles halve weight refetch.
        return 512, 1024, 1024, 96 << 20
    # v7x (64 MiB per TensorCore) or unknown: conservative tiles, default scoped limit.
    return 256, 512, 512, None


_TM, _TN, _TK, _VMEM_LIMIT = _hw_defaults()


def _pick_tile(dim, pref, align):
    """Largest tile <= pref that is a multiple of `align` and divides `dim`; falls back
    to the full dimension (always a legal block shape)."""
    if dim <= pref:
        return dim
    if dim % align:
        return dim
    t = (pref // align) * align
    while t >= align:
        if dim % t == 0:
            return t
        t -= align
    return dim


# ----------------------------- Pallas kernels ------------------------------ #

def _fused_linear_kernel(*refs, do_ln, activation, has_bias, has_residual, single_k):
    """[LN(x)] @ W [+ b] [-> QuickGELU] [+ residual], f32 accumulation on the MXU."""
    it = iter(refs)
    x_ref = next(it)
    w_ref = next(it)
    b_ref = next(it) if has_bias else None
    if do_ln:
        g_ref = next(it)
        beta_ref = next(it)
    res_ref = next(it) if has_residual else None
    o_ref = next(it)
    xln_ref = next(it) if do_ln else None
    acc_ref = None if single_k else next(it)

    if do_ln:
        # LN fusion requires a single K block (tk == K).  The normalized block is cached
        # in VMEM and only recomputed on the first N tile of each M block.
        @pl.when(pl.program_id(1) == 0)
        def _():
            xf = x_ref[...].astype(jnp.float32)
            mean = jnp.mean(xf, axis=-1, keepdims=True)
            xc = xf - mean
            var = jnp.mean(xc * xc, axis=-1, keepdims=True)
            y = xc * jax.lax.rsqrt(var + 1e-5) * g_ref[...] + beta_ref[...]
            xln_ref[...] = y.astype(xln_ref.dtype)      # back to bf16 before the MXU
        x = xln_ref[...]
    else:
        x = x_ref[...]

    def epilogue(y):                                    # y is f32 (tm, tn)
        if has_bias:
            y = y + b_ref[...]
        if activation == "quick_gelu":
            y = y * jax.nn.sigmoid(1.702 * y)
        if has_residual:
            y = y + res_ref[...].astype(jnp.float32)
        o_ref[...] = y.astype(o_ref.dtype)

    if single_k:
        # Single K step: skip the accumulator scratch (no zero-init, no acc->out copy).
        epilogue(jnp.dot(x, w_ref[...], preferred_element_type=jnp.float32))
    else:
        k = pl.program_id(2)

        @pl.when(k == 0)
        def _():
            acc_ref[...] = jnp.zeros_like(acc_ref)

        acc_ref[...] += jnp.dot(x, w_ref[...], preferred_element_type=jnp.float32)

        @pl.when(k == pl.num_programs(2) - 1)
        def _():
            epilogue(acc_ref[...])


def fused_linear(x, w, b=None, *, ln=None, residual=None, activation=None):
    """x:(M,K) @ w:(K,N) [+ b] with optional fused LayerNorm(x), QuickGELU, residual add.
    Weights are expected pre-transposed to (K, N) with LoRA already folded in."""
    M, K = x.shape
    Kw, N = w.shape
    assert Kw == K
    assert activation in (None, "quick_gelu")

    tm = M if M <= _TM else _TM                      # ragged final M block is masked
    tn = _pick_tile(N, _TN, 128)
    tk = K if ln is not None else _pick_tile(K, _TK, 128)
    grid = (pl.cdiv(M, tm), N // tn, K // tk)
    single_k = grid[2] == 1
    if ln is not None:
        assert single_k                              # LN fusion => whole K in one block

    in_specs = [pl.BlockSpec((tm, tk), lambda i, j, k: (i, k)),
                pl.BlockSpec((tk, tn), lambda i, j, k: (k, j))]
    operands = [x, w]
    if b is not None:
        in_specs.append(pl.BlockSpec((1, tn), lambda i, j, k: (0, j)))
        operands.append(b.reshape(1, N).astype(jnp.float32))
    if ln is not None:
        gamma, beta = ln
        in_specs += [pl.BlockSpec((1, tk), lambda i, j, k: (0, k)),
                     pl.BlockSpec((1, tk), lambda i, j, k: (0, k))]
        operands += [gamma.reshape(1, K).astype(jnp.float32),
                     beta.reshape(1, K).astype(jnp.float32)]
    if residual is not None:
        in_specs.append(pl.BlockSpec((tm, tn), lambda i, j, k: (i, j)))
        operands.append(residual)

    scratch = []
    if ln is not None:
        scratch.append(pltpu.VMEM((tm, tk), x.dtype))       # cached LN(x) block
    if not single_k:
        scratch.append(pltpu.VMEM((tm, tn), jnp.float32))   # f32 accumulator

    # The LN cache is reused across the N axis, so keep that axis on a single core.
    sem = (("parallel", "arbitrary", "arbitrary") if ln is not None
           else ("parallel", "parallel", "arbitrary"))

    kern = partial(_fused_linear_kernel, do_ln=ln is not None, activation=activation,
                   has_bias=b is not None, has_residual=residual is not None,
                   single_k=single_k)
    return pl.pallas_call(
        kern,
        out_shape=jax.ShapeDtypeStruct((M, N), x.dtype),
        grid=grid,
        in_specs=in_specs,
        out_specs=pl.BlockSpec((tm, tn), lambda i, j, k: (i, j)),
        scratch_shapes=scratch,
        compiler_params=pltpu.CompilerParams(
            dimension_semantics=sem, vmem_limit_bytes=_VMEM_LIMIT),
    )(*operands)


def _layernorm_kernel(x_ref, g_ref, b_ref, o_ref):
    x = x_ref[...].astype(jnp.float32)
    mean = jnp.mean(x, axis=-1, keepdims=True)
    xc = x - mean
    var = jnp.mean(xc * xc, axis=-1, keepdims=True)
    o_ref[...] = (xc * jax.lax.rsqrt(var + 1e-5) * g_ref[...] + b_ref[...]).astype(o_ref.dtype)


def pallas_layernorm(x, gamma, beta):
    """Standalone LayerNorm (only for ln_pre; the other LNs are fused into matmuls)."""
    M, D = x.shape
    tm = M if M <= 512 else 512
    return pl.pallas_call(
        _layernorm_kernel,
        out_shape=jax.ShapeDtypeStruct((M, D), x.dtype),
        grid=(pl.cdiv(M, tm),),
        in_specs=[pl.BlockSpec((tm, D), lambda i: (i, 0)),
                  pl.BlockSpec((1, D), lambda i: (0, 0)),
                  pl.BlockSpec((1, D), lambda i: (0, 0))],
        out_specs=pl.BlockSpec((tm, D), lambda i: (i, 0)),
        compiler_params=pltpu.CompilerParams(
            dimension_semantics=("parallel",), vmem_limit_bytes=_VMEM_LIMIT),
    )(x, gamma.reshape(1, D).astype(jnp.float32), beta.reshape(1, D).astype(jnp.float32))


def _attn_kernel(qkv_ref, o_ref, *, n_head):
    """One 'view batch' of the reference's (B, S, H, 3*dh) qkv view per grid step.
    qkv columns are head-major panels [q | k | v] (see prepare_params) and the
    1/sqrt(dh) scale is already folded into the q projection.  Per-head results are
    written straight into their output column slice (no concat, no vreg pile-up)."""
    qkv = qkv_ref[0]                                     # (S, 3D) in compute dtype
    d_model = qkv.shape[-1] // 3
    dh = d_model // n_head
    q_all = qkv[:, :d_model]
    k_all = qkv[:, d_model:2 * d_model]
    v_all = qkv[:, 2 * d_model:]
    for h in range(n_head):
        q = q_all[:, h * dh:(h + 1) * dh]
        k = k_all[:, h * dh:(h + 1) * dh]
        v = v_all[:, h * dh:(h + 1) * dh]
        s = jax.lax.dot_general(q, k, (((1,), (1,)), ((), ())),
                                preferred_element_type=jnp.float32)      # (S, S) f32
        s = s - jnp.max(s, axis=-1, keepdims=True)
        p = jnp.exp(s)
        p = p * pl.reciprocal(jnp.sum(p, axis=-1, keepdims=True), approx=True)
        vals = jnp.dot(p.astype(v.dtype), v, preferred_element_type=jnp.float32)
        o_ref[0, :, h * dh:(h + 1) * dh] = vals.astype(o_ref.dtype)


def pallas_attention(qkv_view, n_head):
    """qkv_view: (B, S, 3D) in the reference module's (batch-mixed) view coordinates."""
    B, S, threeD = qkv_view.shape
    D = threeD // 3
    # TODO(synk): a (B, n_head) grid with BlockSpec head slicing needs 3*dh % 128 == 0;
    #             with typical dh=64 the head loop stays in-kernel instead.
    return pl.pallas_call(
        partial(_attn_kernel, n_head=n_head),
        out_shape=jax.ShapeDtypeStruct((B, S, D), qkv_view.dtype),
        grid=(B,),
        in_specs=[pl.BlockSpec((1, S, threeD), lambda b: (b, 0, 0))],
        out_specs=pl.BlockSpec((1, S, D), lambda b: (b, 0, 0)),
        compiler_params=pltpu.CompilerParams(
            dimension_semantics=("parallel",), vmem_limit_bytes=_VMEM_LIMIT),
    )(qkv_view)


# ----------------------------- model (glue) -------------------------------- #

def residual_block(x_flat, p, n_head, B, S, D):
    """x_flat: (S*B, D), rows in (seq, batch) order — exactly the reference's (S, B, D)
    buffer layout.  Reproduces ResidualAttentionBlock (including the batch-mixing view)."""
    # attention branch: ln_1 + qkv_proj fused.  Rows are already in the reference's
    # (S, B, 3D) order, so the quirky view (S,B,3D)->(B,S,H,3dh) is a free reshape.
    qkv = fused_linear(x_flat, p["qkv_wt"], p["qkv_b"], ln=(p["ln1_g"], p["ln1_b"]))
    vals = pallas_attention(qkv.reshape(B, S, 3 * D), n_head)       # view coords (B,S,D)
    # The reference's own `.permute(1,0,2)` back to (S,B,D): one small D-wide relayout
    # per layer (3x fewer bytes than transposing the qkv slab); then out_proj + residual
    # rows line up elementwise and are fused into one matmul epilogue.
    vals_sb = vals.transpose(1, 0, 2).reshape(S * B, D)
    x_flat = fused_linear(vals_sb, p["out_wt"], p["out_b"], residual=x_flat)

    # MLP branch: ln_2 + c_fc + QuickGELU fused; c_proj + residual fused.
    h = fused_linear(x_flat, p["fc_wt"], p["fc_b"],
                     ln=(p["ln2_g"], p["ln2_b"]), activation="quick_gelu")
    x_flat = fused_linear(h, p["cproj_wt"], p["cproj_b"], residual=x_flat)
    return x_flat


def vision_transformer(x, params, *, patch_size, width, heads):
    """x: (B, 3, H, W) NCHW  ->  (B, output_dim)."""
    B, C, H, W = x.shape
    ps, D = patch_size, width
    Hp, Wp = H // ps, W // ps
    n_patch = Hp * Wp
    in_dtype = x.dtype
    cdt = params["conv_wt"].dtype                        # compute dtype (bf16 by default)

    # conv1 (kernel == stride == patch, no bias) as im2col + matmul (no synthetic bias).
    patches = x.reshape(B, C, Hp, ps, Wp, ps).transpose(0, 2, 4, 1, 3, 5)
    patches = patches.reshape(B * n_patch, C * ps * ps).astype(cdt)
    tok = fused_linear(patches, params["conv_wt"]).reshape(B, n_patch, D)

    cls = jnp.broadcast_to(params["class_emb"], (B, 1, D))
    tok = jnp.concatenate([cls, tok], axis=1) + params["pos_emb"]
    S = n_patch + 1

    # Carry tokens flat as (S*B, D) in (seq, batch) row order: single transpose at model
    # entry; per-layer qkv view is free and cls tokens are the first B rows at the end.
    x_flat = tok.transpose(1, 0, 2).reshape(S * B, D)
    x_flat = pallas_layernorm(x_flat, params["ln_pre_g"], params["ln_pre_b"])

    for bp in params["blocks"]:
        x_flat = residual_block(x_flat, bp, heads, B, S, D)

    cls_tok = x_flat[:B]                                 # rows (s=0, b=0..B-1)
    out = fused_linear(cls_tok, params["proj"],          # ln_post fused, no bias
                       ln=(params["ln_post_g"], params["ln_post_b"]))
    return out.astype(in_dtype)


# --------------------------- parameter handling ----------------------------- #

def _xavier_uniform(key, shape):
    fan_out, fan_in = shape
    limit = math.sqrt(6.0 / (fan_in + fan_out))
    return jax.random.uniform(key, shape, jnp.float32, -limit, limit)


def _init_block(key, D):
    ks = jax.random.split(key, 8)
    return {
        "qkv_w": _xavier_uniform(ks[0], (3 * D, D)),
        "qkv_b": jnp.zeros((3 * D,), jnp.float32),
        "qkv_la": 0.02 * jax.random.normal(ks[1], (LORA_RANK, D), jnp.float32),
        "qkv_lb": jnp.zeros((3 * D, LORA_RANK), jnp.float32),
        "out_w": _xavier_uniform(ks[2], (D, D)),
        "out_b": jnp.zeros((D,), jnp.float32),
        "out_la": 0.02 * jax.random.normal(ks[3], (LORA_RANK, D), jnp.float32),
        "out_lb": jnp.zeros((D, LORA_RANK), jnp.float32),
        "fc_w": _xavier_uniform(ks[4], (4 * D, D)),
        "fc_b": jnp.zeros((4 * D,), jnp.float32),
        "fc_la": 0.02 * jax.random.normal(ks[5], (LORA_RANK, D), jnp.float32),
        "fc_lb": jnp.zeros((4 * D, LORA_RANK), jnp.float32),
        "cproj_w": _xavier_uniform(ks[6], (D, 4 * D)),
        "cproj_b": jnp.zeros((D,), jnp.float32),
        "cproj_la": 0.02 * jax.random.normal(ks[7], (LORA_RANK, 4 * D), jnp.float32),
        "cproj_lb": jnp.zeros((D, LORA_RANK), jnp.float32),
        "ln1_g": jnp.ones((D,), jnp.float32), "ln1_b": jnp.zeros((D,), jnp.float32),
        "ln2_g": jnp.ones((D,), jnp.float32), "ln2_b": jnp.zeros((D,), jnp.float32),
    }


def init_vit_params(key, input_resolution, patch_size, width, layers, heads, output_dim):
    del heads  # heads only affects the forward-time split / param prep
    ks = jax.random.split(key, 4 + layers)
    scale = width ** -0.5
    n_patch = (input_resolution // patch_size) ** 2
    fan_in = 3 * patch_size * patch_size
    bound = 1.0 / math.sqrt(fan_in)  # PyTorch Conv2d default init range
    return {
        "conv_w": jax.random.uniform(ks[0], (width, fan_in), jnp.float32, -bound, bound),
        "class_emb": scale * jax.random.normal(ks[1], (width,), jnp.float32),
        "pos_emb": scale * jax.random.normal(ks[2], (n_patch + 1, width), jnp.float32),
        "ln_pre_g": jnp.ones((width,), jnp.float32),
        "ln_pre_b": jnp.zeros((width,), jnp.float32),
        "ln_post_g": jnp.ones((width,), jnp.float32),
        "ln_post_b": jnp.zeros((width,), jnp.float32),
        "proj": scale * jax.random.normal(ks[3], (width, output_dim), jnp.float32),
        "blocks": [_init_block(ks[4 + i], width) for i in range(layers)],
    }


def _qkv_head_major_perm(D, n_head):
    """Column permutation mapping the reference's per-head interleaved [q|k|v] qkv output
    layout to head-major [q-panel | k-panel | v-panel] (row-mixing view is unaffected)."""
    dh = D // n_head
    cols = []
    for t in range(3):                                    # q, k, v panels
        for h in range(n_head):
            cols.append(np.arange(3 * dh * h + t * dh, 3 * dh * h + (t + 1) * dh))
    return np.concatenate(cols)


def prepare_params(raw, *, n_head, dtype=COMPUTE_DTYPE):
    """One-time param prep: fold LoRA into the dense weights (W_eff = W + scale*B@A),
    pre-transpose every weight to (K, N), permute the qkv columns to head-major panels,
    fold the 1/sqrt(dh) attention scale into the q panel, and cast weights/embeddings to
    the matmul compute dtype (biases and LN params stay f32)."""
    def fold_t(w, la, lb):    # w:(N,K), la:(r,K), lb:(N,r)  ->  (K, N)
        return (w + LORA_SCALE * (lb @ la)).T

    D = raw["ln_pre_g"].shape[0]
    dh = D // n_head
    perm = _qkv_head_major_perm(D, n_head)
    qscale = 1.0 / math.sqrt(dh)

    p = {
        "conv_wt": raw["conv_w"].T.astype(dtype),
        "class_emb": raw["class_emb"].astype(dtype),
        "pos_emb": raw["pos_emb"].astype(dtype),
        "ln_pre_g": raw["ln_pre_g"], "ln_pre_b": raw["ln_pre_b"],
        "ln_post_g": raw["ln_post_g"], "ln_post_b": raw["ln_post_b"],
        "proj": raw["proj"].astype(dtype),               # already (K, N)
        "blocks": [],
    }
    for b in raw["blocks"]:
        qkv_wt = fold_t(b["qkv_w"], b["qkv_la"], b["qkv_lb"])[:, perm]
        qkv_b = b["qkv_b"][perm]
        qkv_wt = qkv_wt.at[:, :D].multiply(qscale)       # fold attention scale into q
        qkv_b = qkv_b.at[:D].multiply(qscale)
        p["blocks"].append({
            "qkv_wt": qkv_wt.astype(dtype), "qkv_b": qkv_b,
            "out_wt": fold_t(b["out_w"], b["out_la"], b["out_lb"]).astype(dtype),
            "out_b": b["out_b"],
            "fc_wt": fold_t(b["fc_w"], b["fc_la"], b["fc_lb"]).astype(dtype),
            "fc_b": b["fc_b"],
            "cproj_wt": fold_t(b["cproj_w"], b["cproj_la"], b["cproj_lb"]).astype(dtype),
            "cproj_b": b["cproj_b"],
            "ln1_g": b["ln1_g"], "ln1_b": b["ln1_b"],
            "ln2_g": b["ln2_g"], "ln2_b": b["ln2_b"],
        })
    return p


# ---------------------------------- main ------------------------------------ #

if __name__ == "__main__":
    input_resolution, patch_size = 16, 4
    width, layers, heads, output_dim = 32, 2, 4, 16
    batch = 2

    key = jax.random.PRNGKey(0)
    kp, kx = jax.random.split(key)
    raw = init_vit_params(kp, input_resolution, patch_size, width, layers, heads, output_dim)
    params = prepare_params(raw, n_head=heads)   # fold LoRA, permute qkv, cast to bf16
    x = jax.random.normal(kx, (batch, 3, input_resolution, input_resolution), jnp.float32)

    fwd = jax.jit(partial(vision_transformer, patch_size=patch_size, width=width, heads=heads))
    out = fwd(x, params)
    jax.block_until_ready(out)

    assert out.shape == (batch, output_dim), out.shape
    assert bool(jnp.all(jnp.isfinite(out.astype(jnp.float32))))
    print("KERNEL_OK")
</pallas_src>

<mosaic_0001>
module attributes {stable_mosaic.version = 11 : i64} {
  func.func @_fused_linear_kernel(%arg0: i32, %arg1: i32, %arg2: i32, %arg3: memref<32x48xbf16, #tpu.memory_space<vmem>>, %arg4: memref<48x32xbf16, #tpu.memory_space<vmem>>, %arg5: memref<32x32xbf16, #tpu.memory_space<vmem>>) attributes {dimension_semantics = [#tpu.dimension_semantics<parallel>, #tpu.dimension_semantics<parallel>, #tpu.dimension_semantics<arbitrary>], iteration_bounds = array<i64: 1, 1, 1>, scalar_prefetch = 0 : i64, scratch_operands = 0 : i64, tpu.core_type = #tpu.core_type<tc>, window_params = [{transform_indices = @transform_0, window_bounds = array<i64: 32, 48>}, {transform_indices = @transform_1, window_bounds = array<i64: 48, 32>}, {transform_indices = @transform_2, window_bounds = array<i64: 32, 32>}]} {
    %c0 = arith.constant 0 : index
    %c0_0 = arith.constant 0 : index
    %0 = vector.load %arg3[%c0, %c0_0] : memref<32x48xbf16, #tpu.memory_space<vmem>>, vector<32x48xbf16>
    %c0_1 = arith.constant 0 : index
    %c0_2 = arith.constant 0 : index
    %1 = vector.load %arg4[%c0_1, %c0_2] : memref<48x32xbf16, #tpu.memory_space<vmem>>, vector<48x32xbf16>
    %cst = arith.constant dense<0.000000e+00> : vector<32x32xf32>
    %2 = tpu.matmul %0, %1, %cst {dimension_numbers = #tpu.dot_dimension_numbers<[1], [0], [0], [1], [0, 0, 1, 1], [], []>} : vector<32x48xbf16>, vector<48x32xbf16>, vector<32x32xf32> -> vector<32x32xf32>
    %3 = arith.truncf %2 : vector<32x32xf32> to vector<32x32xbf16>
    %c0_3 = arith.constant 0 : index
    %c0_4 = arith.constant 0 : index
    %4 = vector.load %arg5[%c0_3, %c0_4] : memref<32x32xbf16, #tpu.memory_space<vmem>>, vector<32x32xbf16>
    tpu.vector_store %arg5[%c0_3, %c0_4], %3 {strides = array<i32>} : memref<32x32xbf16, #tpu.memory_space<vmem>>, vector<32x32xbf16>,
    return
  }
  func.func @transform_0(%arg0: i32, %arg1: i32, %arg2: i32) -> (i32, i32) {
    %c0_i32 = arith.constant 0 : i32
    return %arg0, %arg2 : i32, i32
  }
  func.func @transform_1(%arg0: i32, %arg1: i32, %arg2: i32) -> (i32, i32) {
    %c0_i32 = arith.constant 0 : i32
    return %arg2, %arg1 : i32, i32
  }
  func.func @transform_2(%arg0: i32, %arg1: i32, %arg2: i32) -> (i32, i32) {
    %c0_i32 = arith.constant 0 : i32
    return %arg0, %arg1 : i32, i32
  }
}

module attributes {stable_mosaic.version = 11 : i64} {
  func.func @_fused_linear_kernel(%arg0: i32, %arg1: i32, %arg2: i32, %arg3: memref<34x32xbf16, #tpu.memory_space<vmem>>, %arg4: memref<32x96xbf16, #tpu.memory_space<vmem>>, %arg5: memref<1x96xf32, #tpu.memory_space<vmem>>, %arg6: memref<1x32xf32, #tpu.memory_space<vmem>>, %arg7: memref<1x32xf32, #tpu.memory_space<vmem>>, %arg8: memref<34x96xbf16, #tpu.memory_space<vmem>>, %arg9: memref<34x32xbf16, #tpu.memory_space<vmem>>) attributes {dimension_semantics = [#tpu.dimension_semantics<parallel>, #tpu.dimension_semantics<arbitrary>, #tpu.dimension_semantics<arbitrary>], iteration_bounds = array<i64: 1, 1, 1>, scalar_prefetch = 0 : i64, scratch_operands = 1 : i64, tpu.core_type = #tpu.core_type<tc>, window_params = [{transform_indices = @transform_0, window_bounds = array<i64: 34, 32>}, {transform_indices = @transform_1, window_bounds = array<i64: 32, 96>}, {transform_indices = @transform_2, window_bounds = array<i64: 1, 96>}, {transform_indices = @transform_3, window_bounds = array<i64: 1, 32>}, {transform_indices = @transform_4, window_bounds = array<i64: 1, 32>}, {transform_indices = @transform_5, window_bounds = array<i64: 34, 96>}]} {
    %c0_i32 = arith.constant 0 : i32
    %0 = arith.cmpi eq, %arg1, %c0_i32 : i32
    %1 = arith.extui %0 : i1 to i32
    %c0_i32_0 = arith.constant 0 : i32
    %2 = arith.cmpi ne, %1, %c0_i32_0 : i32
    scf.if %2 {
      %c0_8 = arith.constant 0 : index
      %c0_9 = arith.constant 0 : index
      %11 = vector.load %arg3[%c0_8, %c0_9] : memref<34x32xbf16, #tpu.memory_space<vmem>>, vector<34x32xbf16>
      %12 = arith.extf %11 : vector<34x32xbf16> to vector<34x32xf32>
      %cst_10 = arith.constant dense<0.000000e+00> : vector<34xf32>
      %13 = vector.multi_reduction <add>, %12, %cst_10 [1] : vector<34x32xf32> to vector<34xf32>
      %14 = vector.shape_cast %13 : vector<34xf32> to vector<34x1xf32>
      %cst_11 = arith.constant 3.200000e+01 : f32
      %15 = vector.broadcast %cst_11 : f32 to vector<34x1xf32>
      %16 = arith.divf %14, %15 : vector<34x1xf32>
      %17 = vector.broadcast %16 : vector<34x1xf32> to vector<34x32xf32>
      %18 = arith.subf %12, %17 : vector<34x32xf32>
      %19 = arith.mulf %18, %18 : vector<34x32xf32>
      %cst_12 = arith.constant dense<0.000000e+00> : vector<34xf32>
      %20 = vector.multi_reduction <add>, %19, %cst_12 [1] : vector<34x32xf32> to vector<34xf32>
      %21 = vector.shape_cast %20 : vector<34xf32> to vector<34x1xf32>
      %cst_13 = arith.constant 3.200000e+01 : f32
      %22 = vector.broadcast %cst_13 : f32 to vector<34x1xf32>
      %23 = arith.divf %21, %22 : vector<34x1xf32>
      %cst_14 = arith.constant 9.99999974E-6 : f32
      %24 = vector.broadcast %cst_14 : f32 to vector<34x1xf32>
      %25 = arith.addf %23, %24 : vector<34x1xf32>
      %26 = math.rsqrt %25 : vector<34x1xf32>
      %27 = vector.broadcast %26 : vector<34x1xf32> to vector<34x32xf32>
      %28 = arith.mulf %18, %27 : vector<34x32xf32>
      %c0_15 = arith.constant 0 : index
      %c0_16 = arith.constant 0 : index
      %29 = vector.load %arg6[%c0_15, %c0_16] : memref<1x32xf32, #tpu.memory_space<vmem>>, vector<1x32xf32>
      %30 = vector.broadcast %29 : vector<1x32xf32> to vector<34x32xf32>
      %31 = arith.mulf %28, %30 : vector<34x32xf32>
      %c0_17 = arith.constant 0 : index
      %c0_18 = arith.constant 0 : index
      %32 = vector.load %arg7[%c0_17, %c0_18] : memref<1x32xf32, #tpu.memory_space<vmem>>, vector<1x32xf32>
      %33 = vector.broadcast %32 : vector<1x32xf32> to vector<34x32xf32>
      %34 = arith.addf %31, %33 : vector<34x32xf32>
      %35 = arith.truncf %34 : vector<34x32xf32> to vector<34x32xbf16>
      %c0_19 = arith.constant 0 : index
      %c0_20 = arith.constant 0 : index
      %36 = vector.load %arg9[%c0_19, %c0_20] : memref<34x32xbf16, #tpu.memory_space<vmem>>, vector<34x32xbf16>
      tpu.vector_store %arg9[%c0_19, %c0_20], %35 {strides = array<i32>} : memref<34x32xbf16, #tpu.memory_space<vmem>>, vector<34x32xbf16>,
    } else {
    }
    %c0 = arith.constant 0 : index
    %c0_1 = arith.constant 0 : index
    %3 = vector.load %arg9[%c0, %c0_1] : memref<34x32xbf16, #tpu.memory_space<vmem>>, vector<34x32xbf16>
    %c0_2 = arith.constant 0 : index
    %c0_3 = arith.constant 0 : index
    %4 = vector.load %arg4[%c0_2, %c0_3] : memref<32x96xbf16, #tpu.memory_space<vmem>>, vector<32x96xbf16>
    %cst = arith.constant dense<0.000000e+00> : vector<34x96xf32>
    %5 = tpu.matmul %3, %4, %cst {dimension_numbers = #tpu.dot_dimension_numbers<[1], [0], [0], [1], [0, 0, 1, 1], [], []>} : vector<34x32xbf16>, vector<32x96xbf16>, vector<34x96xf32> -> vector<34x96xf32>
    %c0_4 = arith.constant 0 : index
    %c0_5 = arith.constant 0 : index
    %6 = vector.load %arg5[%c0_4, %c0_5] : memref<1x96xf32, #tpu.memory_space<vmem>>, vector<1x96xf32>
    %7 = vector.broadcast %6 : vector<1x96xf32> to vector<34x96xf32>
    %8 = arith.addf %5, %7 : vector<34x96xf32>
    %9 = arith.truncf %8 : vector<34x96xf32> to vector<34x96xbf16>
    %c0_6 = arith.constant 0 : index
    %c0_7 = arith.constant 0 : index
    %10 = vector.load %arg8[%c0_6, %c0_7] : memref<34x96xbf16, #tpu.memory_space<vmem>>, vector<34x96xbf16>
    tpu.vector_store %arg8[%c0_6, %c0_7], %9 {strides = array<i32>} : memref<34x96xbf16, #tpu.memory_space<vmem>>, vector<34x96xbf16>,
    return
  }
  func.func @transform_0(%arg0: i32, %arg1: i32, %arg2: i32) -> (i32, i32) {
    %c0_i32 = arith.constant 0 : i32
    return %arg0, %arg2 : i32, i32
  }
  func.func @transform_1(%arg0: i32, %arg1: i32, %arg2: i32) -> (i32, i32) {
    %c0_i32 = arith.constant 0 : i32
    return %arg2, %arg1 : i32, i32
  }
  func.func @transform_2(%arg0: i32, %arg1: i32, %arg2: i32) -> (i32, i32) {
    %c0_i32 = arith.constant 0 : i32
    %c0_i32_0 = arith.constant 0 : i32
    return %c0_i32, %arg1 : i32, i32
  }
  func.func @transform_3(%arg0: i32, %arg1: i32, %arg2: i32) -> (i32, i32) {
    %c0_i32 = arith.constant 0 : i32
    %c0_i32_0 = arith.constant 0 : i32
    return %c0_i32, %arg2 : i32, i32
  }
  func.func @transform_4(%arg0: i32, %arg1: i32, %arg2: i32) -> (i32, i32) {
    %c0_i32 = arith.constant 0 : i32
    %c0_i32_0 = arith.constant 0 : i32
    return %c0_i32, %arg2 : i32, i32
  }
  func.func @transform_5(%arg0: i32, %arg1: i32, %arg2: i32) -> (i32, i32) {
    %c0_i32 = arith.constant 0 : i32
    return %arg0, %arg1 : i32, i32
  }
}

module attributes {stable_mosaic.version = 11 : i64} {
  func.func @_layernorm_kernel(%arg0: i32, %arg1: memref<34x32xbf16, #tpu.memory_space<vmem>>, %arg2: memref<1x32xf32, #tpu.memory_space<vmem>>, %arg3: memref<1x32xf32, #tpu.memory_space<vmem>>, %arg4: memref<34x32xbf16, #tpu.memory_space<vmem>>) attributes {dimension_semantics = [#tpu.dimension_semantics<parallel>], iteration_bounds = array<i64: 1>, scalar_prefetch = 0 : i64, scratch_operands = 0 : i64, tpu.core_type = #tpu.core_type<tc>, window_params = [{transform_indices = @transform_0, window_bounds = array<i64: 34, 32>}, {pipeline_mode = #tpu.pipeline_mode<synchronous>, transform_indices = @transform_1, window_bounds = array<i64: 1, 32>}, {pipeline_mode = #tpu.pipeline_mode<synchronous>, transform_indices = @transform_2, window_bounds = array<i64: 1, 32>}, {transform_indices = @transform_3, window_bounds = array<i64: 34, 32>}]} {
    %c0 = arith.constant 0 : index
    %c0_0 = arith.constant 0 : index
    %0 = vector.load %arg1[%c0, %c0_0] : memref<34x32xbf16, #tpu.memory_space<vmem>>, vector<34x32xbf16>
    %1 = arith.extf %0 : vector<34x32xbf16> to vector<34x32xf32>
    %cst = arith.constant dense<0.000000e+00> : vector<34xf32>
    %2 = vector.multi_reduction <add>, %1, %cst [1] : vector<34x32xf32> to vector<34xf32>
    %3 = vector.shape_cast %2 : vector<34xf32> to vector<34x1xf32>
    %cst_1 = arith.constant 3.200000e+01 : f32
    %4 = vector.broadcast %cst_1 : f32 to vector<34x1xf32>
    %5 = arith.divf %3, %4 : vector<34x1xf32>
    %6 = vector.broadcast %5 : vector<34x1xf32> to vector<34x32xf32>
    %7 = arith.subf %1, %6 : vector<34x32xf32>
    %8 = arith.mulf %7, %7 : vector<34x32xf32>
    %cst_2 = arith.constant dense<0.000000e+00> : vector<34xf32>
    %9 = vector.multi_reduction <add>, %8, %cst_2 [1] : vector<34x32xf32> to vector<34xf32>
    %10 = vector.shape_cast %9 : vector<34xf32> to vector<34x1xf32>
    %cst_3 = arith.constant 3.200000e+01 : f32
    %11 = vector.broadcast %cst_3 : f32 to vector<34x1xf32>
    %12 = arith.divf %10, %11 : vector<34x1xf32>
    %cst_4 = arith.constant 9.99999974E-6 : f32
    %13 = vector.broadcast %cst_4 : f32 to vector<34x1xf32>
    %14 = arith.addf %12, %13 : vector<34x1xf32>
    %15 = math.rsqrt %14 : vector<34x1xf32>
    %16 = vector.broadcast %15 : vector<34x1xf32> to vector<34x32xf32>
    %17 = arith.mulf %7, %16 : vector<34x32xf32>
    %c0_5 = arith.constant 0 : index
    %c0_6 = arith.constant 0 : index
    %18 = vector.load %arg2[%c0_5, %c0_6] : memref<1x32xf32, #tpu.memory_space<vmem>>, vector<1x32xf32>
    %19 = vector.broadcast %18 : vector<1x32xf32> to vector<34x32xf32>
    %20 = arith.mulf %17, %19 : vector<34x32xf32>
    %c0_7 = arith.constant 0 : index
    %c0_8 = arith.constant 0 : index
    %21 = vector.load %arg3[%c0_7, %c0_8] : memref<1x32xf32, #tpu.memory_space<vmem>>, vector<1x32xf32>
    %22 = vector.broadcast %21 : vector<1x32xf32> to vector<34x32xf32>
    %23 = arith.addf %20, %22 : vector<34x32xf32>
    %24 = arith.truncf %23 : vector<34x32xf32> to vector<34x32xbf16>
    %c0_9 = arith.constant 0 : index
    %c0_10 = arith.constant 0 : index
    %25 = vector.load %arg4[%c0_9, %c0_10] : memref<34x32xbf16, #tpu.memory_space<vmem>>, vector<34x32xbf16>
    tpu.vector_store %arg4[%c0_9, %c0_10], %24 {strides = array<i32>} : memref<34x32xbf16, #tpu.memory_space<vmem>>, vector<34x32xbf16>,
    return
  }
  func.func @transform_0(%arg0: i32) -> (i32, i32) {
    %c0_i32 = arith.constant 0 : i32
    %c0_i32_0 = arith.constant 0 : i32
    return %arg0, %c0_i32 : i32, i32
  }
  func.func @transform_1(%arg0: i32) -> (i32, i32) {
    %c0_i32 = arith.constant 0 : i32
    %c0_i32_0 = arith.constant 0 : i32
    %c0_i32_1 = arith.constant 0 : i32
    return %c0_i32, %c0_i32_0 : i32, i32
  }
  func.func @transform_2(%arg0: i32) -> (i32, i32) {
    %c0_i32 = arith.constant 0 : i32
    %c0_i32_0 = arith.constant 0 : i32
    %c0_i32_1 = arith.constant 0 : i32
    return %c0_i32, %c0_i32_0 : i32, i32
  }
  func.func @transform_3(%arg0: i32) -> (i32, i32) {
    %c0_i32 = arith.constant 0 : i32
    %c0_i32_0 = arith.constant 0 : i32
    return %arg0, %c0_i32 : i32, i32
  }
}

module attributes {stable_mosaic.version = 11 : i64} {
  func.func @_attn_kernel(%arg0: i32, %arg1: memref<1x17x96xbf16, #tpu.memory_space<vmem>>, %arg2: memref<1x17x32xbf16, #tpu.memory_space<vmem>>) attributes {dimension_semantics = [#tpu.dimension_semantics<parallel>], iteration_bounds = array<i64: 2>, scalar_prefetch = 0 : i64, scratch_operands = 0 : i64, tpu.core_type = #tpu.core_type<tc>, window_params = [{transform_indices = @transform_0, window_bounds = array<i64: 1, 17, 96>}, {transform_indices = @transform_1, window_bounds = array<i64: 1, 17, 32>}]} {
    %c0 = arith.constant 0 : index
    %c0_0 = arith.constant 0 : index
    %c0_1 = arith.constant 0 : index
    %0 = vector.load %arg1[%c0, %c0_0, %c0_1] : memref<1x17x96xbf16, #tpu.memory_space<vmem>>, vector<1x17x96xbf16>
    %1 = vector.shape_cast %0 : vector<1x17x96xbf16> to vector<17x96xbf16>
    %2 = vector.extract_strided_slice %1 {offsets = [0, 0], sizes = [17, 32], strides = [1, 1]} : vector<17x96xbf16> to vector<17x32xbf16>
    %3 = vector.extract_strided_slice %1 {offsets = [0, 32], sizes = [17, 32], strides = [1, 1]} : vector<17x96xbf16> to vector<17x32xbf16>
    %4 = vector.extract_strided_slice %1 {offsets = [0, 64], sizes = [17, 32], strides = [1, 1]} : vector<17x96xbf16> to vector<17x32xbf16>
    %5 = vector.extract_strided_slice %2 {offsets = [0, 0], sizes = [17, 8], strides = [1, 1]} : vector<17x32xbf16> to vector<17x8xbf16>
    %6 = vector.extract_strided_slice %3 {offsets = [0, 0], sizes = [17, 8], strides = [1, 1]} : vector<17x32xbf16> to vector<17x8xbf16>
    %7 = vector.extract_strided_slice %4 {offsets = [0, 0], sizes = [17, 8], strides = [1, 1]} : vector<17x32xbf16> to vector<17x8xbf16>
    %cst = arith.constant dense<0.000000e+00> : vector<17x17xf32>
    %8 = tpu.matmul %5, %6, %cst {dimension_numbers = #tpu.dot_dimension_numbers<[1], [1], [0], [0], [0, 0, 1, 0], [], []>} : vector<17x8xbf16>, vector<17x8xbf16>, vector<17x17xf32> -> vector<17x17xf32>
    %cst_2 = arith.constant dense<0xFF800000> : vector<17xf32>
    %9 = vector.multi_reduction <maximumf>, %8, %cst_2 [1] : vector<17x17xf32> to vector<17xf32>
    %10 = vector.shape_cast %9 : vector<17xf32> to vector<17x1xf32>
    %11 = vector.broadcast %10 : vector<17x1xf32> to vector<17x17xf32>
    %12 = arith.subf %8, %11 : vector<17x17xf32>
    %13 = math.exp %12 : vector<17x17xf32>
    %cst_3 = arith.constant dense<0.000000e+00> : vector<17xf32>
    %14 = vector.multi_reduction <add>, %13, %cst_3 [1] : vector<17x17xf32> to vector<17xf32>
    %15 = vector.shape_cast %14 : vector<17xf32> to vector<17x1xf32>
    %16 = tpu.reciprocal %15 {approx = true} : vector<17x1xf32> -> vector<17x1xf32>
    %17 = vector.broadcast %16 : vector<17x1xf32> to vector<17x17xf32>
    %18 = arith.mulf %13, %17 : vector<17x17xf32>
    %19 = arith.truncf %18 : vector<17x17xf32> to vector<17x17xbf16>
    %cst_4 = arith.constant dense<0.000000e+00> : vector<17x8xf32>
    %20 = tpu.matmul %19, %7, %cst_4 {dimension_numbers = #tpu.dot_dimension_numbers<[1], [0], [0], [1], [0, 0, 1, 1], [], []>} : vector<17x17xbf16>, vector<17x8xbf16>, vector<17x8xf32> -> vector<17x8xf32>
    %21 = arith.truncf %20 : vector<17x8xf32> to vector<17x8xbf16>
    %c0_5 = arith.constant 0 : index
    %c0_6 = arith.constant 0 : index
    %c0_7 = arith.constant 0 : index
    %22 = vector.load %arg2[%c0_5, %c0_6, %c0_7] : memref<1x17x32xbf16, #tpu.memory_space<vmem>>, vector<1x17x8xbf16>
    %23 = vector.shape_cast %22 : vector<1x17x8xbf16> to vector<17x8xbf16>
    %24 = vector.shape_cast %21 : vector<17x8xbf16> to vector<1x17x8xbf16>
    tpu.vector_store %arg2[%c0_5, %c0_6, %c0_7], %24 {strides = array<i32>} : memref<1x17x32xbf16, #tpu.memory_space<vmem>>, vector<1x17x8xbf16>,
    %25 = vector.extract_strided_slice %2 {offsets = [0, 8], sizes = [17, 8], strides = [1, 1]} : vector<17x32xbf16> to vector<17x8xbf16>
    %26 = vector.extract_strided_slice %3 {offsets = [0, 8], sizes = [17, 8], strides = [1, 1]} : vector<17x32xbf16> to vector<17x8xbf16>
    %27 = vector.extract_strided_slice %4 {offsets = [0, 8], sizes = [17, 8], strides = [1, 1]} : vector<17x32xbf16> to vector<17x8xbf16>
    %cst_8 = arith.constant dense<0.000000e+00> : vector<17x17xf32>
    %28 = tpu.matmul %25, %26, %cst_8 {dimension_numbers = #tpu.dot_dimension_numbers<[1], [1], [0], [0], [0, 0, 1, 0], [], []>} : vector<17x8xbf16>, vector<17x8xbf16>, vector<17x17xf32> -> vector<17x17xf32>
    %cst_9 = arith.constant dense<0xFF800000> : vector<17xf32>
    %29 = vector.multi_reduction <maximumf>, %28, %cst_9 [1] : vector<17x17xf32> to vector<17xf32>
    %30 = vector.shape_cast %29 : vector<17xf32> to vector<17x1xf32>
    %31 = vector.broadcast %30 : vector<17x1xf32> to vector<17x17xf32>
    %32 = arith.subf %28, %31 : vector<17x17xf32>
    %33 = math.exp %32 : vector<17x17xf32>
    %cst_10 = arith.constant dense<0.000000e+00> : vector<17xf32>
    %34 = vector.multi_reduction <add>, %33, %cst_10 [1] : vector<17x17xf32> to vector<17xf32>
    %35 = vector.shape_cast %34 : vector<17xf32> to vector<17x1xf32>
    %36 = tpu.reciprocal %35 {approx = true} : vector<17x1xf32> -> vector<17x1xf32>
    %37 = vector.broadcast %36 : vector<17x1xf32> to vector<17x17xf32>
    %38 = arith.mulf %33, %37 : vector<17x17xf32>
    %39 = arith.truncf %38 : vector<17x17xf32> to vector<17x17xbf16>
    %cst_11 = arith.constant dense<0.000000e+00> : vector<17x8xf32>
    %40 = tpu.matmul %39, %27, %cst_11 {dimension_numbers = #tpu.dot_dimension_numbers<[1], [0], [0], [1], [0, 0, 1, 1], [], []>} : vector<17x17xbf16>, vector<17x8xbf16>, vector<17x8xf32> -> vector<17x8xf32>
    %41 = arith.truncf %40 : vector<17x8xf32> to vector<17x8xbf16>
    %c0_12 = arith.constant 0 : index
    %c0_13 = arith.constant 0 : index
    %c8 = arith.constant 8 : index
    %42 = vector.load %arg2[%c0_12, %c0_13, %c8] : memref<1x17x32xbf16, #tpu.memory_space<vmem>>, vector<1x17x8xbf16>
    %43 = vector.shape_cast %42 : vector<1x17x8xbf16> to vector<17x8xbf16>
    %44 = vector.shape_cast %41 : vector<17x8xbf16> to vector<1x17x8xbf16>
    tpu.vector_store %arg2[%c0_12, %c0_13, %c8], %44 {strides = array<i32>} : memref<1x17x32xbf16, #tpu.memory_space<vmem>>, vector<1x17x8xbf16>,
    %45 = vector.extract_strided_slice %2 {offsets = [0, 16], sizes = [17, 8], strides = [1, 1]} : vector<17x32xbf16> to vector<17x8xbf16>
    %46 = vector.extract_strided_slice %3 {offsets = [0, 16], sizes = [17, 8], strides = [1, 1]} : vector<17x32xbf16> to vector<17x8xbf16>
    %47 = vector.extract_strided_slice %4 {offsets = [0, 16], sizes = [17, 8], strides = [1, 1]} : vector<17x32xbf16> to vector<17x8xbf16>
    %cst_14 = arith.constant dense<0.000000e+00> : vector<17x17xf32>
    %48 = tpu.matmul %45, %46, %cst_14 {dimension_numbers = #tpu.dot_dimension_numbers<[1], [1], [0], [0], [0, 0, 1, 0], [], []>} : vector<17x8xbf16>, vector<17x8xbf16>, vector<17x17xf32> -> vector<17x17xf32>
    %cst_15 = arith.constant dense<0xFF800000> : vector<17xf32>
    %49 = vector.multi_reduction <maximumf>, %48, %cst_15 [1] : vector<17x17xf32> to vector<17xf32>
    %50 = vector.shape_cast %49 : vector<17xf32> to vector<17x1xf32>
    %51 = vector.broadcast %50 : vector<17x1xf32> to vector<17x17xf32>
    %52 = arith.subf %48, %51 : vector<17x17xf32>
    %53 = math.exp %52 : vector<17x17xf32>
    %cst_16 = arith.constant dense<0.000000e+00> : vector<17xf32>
    %54 = vector.multi_reduction <add>, %53, %cst_16 [1] : vector<17x17xf32> to vector<17xf32>
    %55 = vector.shape_cast %54 : vector<17xf32> to vector<17x1xf32>
    %56 = tpu.reciprocal %55 {approx = true} : vector<17x1xf32> -> vector<17x1xf32>
    %57 = vector.broadcast %56 : vector<17x1xf32> to vector<17x17xf32>
    %58 = arith.mulf %53, %57 : vector<17x17xf32>
    %59 = arith.truncf %58 : vector<17x17xf32> to vector<17x17xbf16>
    %cst_17 = arith.constant dense<0.000000e+00> : vector<17x8xf32>
    %60 = tpu.matmul %59, %47, %cst_17 {dimension_numbers = #tpu.dot_dimension_numbers<[1], [0], [0], [1], [0, 0, 1, 1], [], []>} : vector<17x17xbf16>, vector<17x8xbf16>, vector<17x8xf32> -> vector<17x8xf32>
    %61 = arith.truncf %60 : vector<17x8xf32> to vector<17x8xbf16>
    %c0_18 = arith.constant 0 : index
    %c0_19 = arith.constant 0 : index
    %c16 = arith.constant 16 : index
    %62 = vector.load %arg2[%c0_18, %c0_19, %c16] : memref<1x17x32xbf16, #tpu.memory_space<vmem>>, vector<1x17x8xbf16>
    %63 = vector.shape_cast %62 : vector<1x17x8xbf16> to vector<17x8xbf16>
    %64 = vector.shape_cast %61 : vector<17x8xbf16> to vector<1x17x8xbf16>
    tpu.vector_store %arg2[%c0_18, %c0_19, %c16], %64 {strides = array<i32>} : memref<1x17x32xbf16, #tpu.memory_space<vmem>>, vector<1x17x8xbf16>,
    %65 = vector.extract_strided_slice %2 {offsets = [0, 24], sizes = [17, 8], strides = [1, 1]} : vector<17x32xbf16> to vector<17x8xbf16>
    %66 = vector.extract_strided_slice %3 {offsets = [0, 24], sizes = [17, 8], strides = [1, 1]} : vector<17x32xbf16> to vector<17x8xbf16>
    %67 = vector.extract_strided_slice %4 {offsets = [0, 24], sizes = [17, 8], strides = [1, 1]} : vector<17x32xbf16> to vector<17x8xbf16>
    %cst_20 = arith.constant dense<0.000000e+00> : vector<17x17xf32>
    %68 = tpu.matmul %65, %66, %cst_20 {dimension_numbers = #tpu.dot_dimension_numbers<[1], [1], [0], [0], [0, 0, 1, 0], [], []>} : vector<17x8xbf16>, vector<17x8xbf16>, vector<17x17xf32> -> vector<17x17xf32>
    %cst_21 = arith.constant dense<0xFF800000> : vector<17xf32>
    %69 = vector.multi_reduction <maximumf>, %68, %cst_21 [1] : vector<17x17xf32> to vector<17xf32>
    %70 = vector.shape_cast %69 : vector<17xf32> to vector<17x1xf32>
    %71 = vector.broadcast %70 : vector<17x1xf32> to vector<17x17xf32>
    %72 = arith.subf %68, %71 : vector<17x17xf32>
    %73 = math.exp %72 : vector<17x17xf32>
    %cst_22 = arith.constant dense<0.000000e+00> : vector<17xf32>
    %74 = vector.multi_reduction <add>, %73, %cst_22 [1] : vector<17x17xf32> to vector<17xf32>
    %75 = vector.shape_cast %74 : vector<17xf32> to vector<17x1xf32>
    %76 = tpu.reciprocal %75 {approx = true} : vector<17x1xf32> -> vector<17x1xf32>
    %77 = vector.broadcast %76 : vector<17x1xf32> to vector<17x17xf32>
    %78 = arith.mulf %73, %77 : vector<17x17xf32>
    %79 = arith.truncf %78 : vector<17x17xf32> to vector<17x17xbf16>
    %cst_23 = arith.constant dense<0.000000e+00> : vector<17x8xf32>
    %80 = tpu.matmul %79, %67, %cst_23 {dimension_numbers = #tpu.dot_dimension_numbers<[1], [0], [0], [1], [0, 0, 1, 1], [], []>} : vector<17x17xbf16>, vector<17x8xbf16>, vector<17x8xf32> -> vector<17x8xf32>
    %81 = arith.truncf %80 : vector<17x8xf32> to vector<17x8xbf16>
    %c0_24 = arith.constant 0 : index
    %c0_25 = arith.constant 0 : index
    %c24 = arith.constant 24 : index
    %82 = vector.load %arg2[%c0_24, %c0_25, %c24] : memref<1x17x32xbf16, #tpu.memory_space<vmem>>, vector<1x17x8xbf16>
    %83 = vector.shape_cast %82 : vector<1x17x8xbf16> to vector<17x8xbf16>
    %84 = vector.shape_cast %81 : vector<17x8xbf16> to vector<1x17x8xbf16>
    tpu.vector_store %arg2[%c0_24, %c0_25, %c24], %84 {strides = array<i32>} : memref<1x17x32xbf16, #tpu.memory_space<vmem>>, vector<1x17x8xbf16>,
    return
  }
  func.func @transform_0(%arg0: i32) -> (i32, i32, i32) {
    %c0_i32 = arith.constant 0 : i32
    %c0_i32_0 = arith.constant 0 : i32
    %c0_i32_1 = arith.constant 0 : i32
    return %arg0, %c0_i32, %c0_i32_0 : i32, i32, i32
  }
  func.func @transform_1(%arg0: i32) -> (i32, i32, i32) {
    %c0_i32 = arith.constant 0 : i32
    %c0_i32_0 = arith.constant 0 : i32
    %c0_i32_1 = arith.constant 0 : i32
    return %arg0, %c0_i32, %c0_i32_0 : i32, i32, i32
  }
}

module attributes {stable_mosaic.version = 11 : i64} {
  func.func @_fused_linear_kernel(%arg0: i32, %arg1: i32, %arg2: i32, %arg3: memref<34x32xbf16, #tpu.memory_space<vmem>>, %arg4: memref<32x128xbf16, #tpu.memory_space<vmem>>, %arg5: memref<1x128xf32, #tpu.memory_space<vmem>>, %arg6: memref<1x32xf32, #tpu.memory_space<vmem>>, %arg7: memref<1x32xf32, #tpu.memory_space<vmem>>, %arg8: memref<34x128xbf16, #tpu.memory_space<vmem>>, %arg9: memref<34x32xbf16, #tpu.memory_space<vmem>>) attributes {dimension_semantics = [#tpu.dimension_semantics<parallel>, #tpu.dimension_semantics<arbitrary>, #tpu.dimension_semantics<arbitrary>], iteration_bounds = array<i64: 1, 1, 1>, scalar_prefetch = 0 : i64, scratch_operands = 1 : i64, tpu.core_type = #tpu.core_type<tc>, window_params = [{transform_indices = @transform_0, window_bounds = array<i64: 34, 32>}, {transform_indices = @transform_1, window_bounds = array<i64: 32, 128>}, {transform_indices = @transform_2, window_bounds = array<i64: 1, 128>}, {transform_indices = @transform_3, window_bounds = array<i64: 1, 32>}, {transform_indices = @transform_4, window_bounds = array<i64: 1, 32>}, {transform_indices = @transform_5, window_bounds = array<i64: 34, 128>}]} {
    %c0_i32 = arith.constant 0 : i32
    %0 = arith.cmpi eq, %arg1, %c0_i32 : i32
    %1 = arith.extui %0 : i1 to i32
    %c0_i32_0 = arith.constant 0 : i32
    %2 = arith.cmpi ne, %1, %c0_i32_0 : i32
    scf.if %2 {
      %c0_10 = arith.constant 0 : index
      %c0_11 = arith.constant 0 : index
      %19 = vector.load %arg3[%c0_10, %c0_11] : memref<34x32xbf16, #tpu.memory_space<vmem>>, vector<34x32xbf16>
      %20 = arith.extf %19 : vector<34x32xbf16> to vector<34x32xf32>
      %cst_12 = arith.constant dense<0.000000e+00> : vector<34xf32>
      %21 = vector.multi_reduction <add>, %20, %cst_12 [1] : vector<34x32xf32> to vector<34xf32>
      %22 = vector.shape_cast %21 : vector<34xf32> to vector<34x1xf32>
      %cst_13 = arith.constant 3.200000e+01 : f32
      %23 = vector.broadcast %cst_13 : f32 to vector<34x1xf32>
      %24 = arith.divf %22, %23 : vector<34x1xf32>
      %25 = vector.broadcast %24 : vector<34x1xf32> to vector<34x32xf32>
      %26 = arith.subf %20, %25 : vector<34x32xf32>
      %27 = arith.mulf %26, %26 : vector<34x32xf32>
      %cst_14 = arith.constant dense<0.000000e+00> : vector<34xf32>
      %28 = vector.multi_reduction <add>, %27, %cst_14 [1] : vector<34x32xf32> to vector<34xf32>
      %29 = vector.shape_cast %28 : vector<34xf32> to vector<34x1xf32>
      %cst_15 = arith.constant 3.200000e+01 : f32
      %30 = vector.broadcast %cst_15 : f32 to vector<34x1xf32>
      %31 = arith.divf %29, %30 : vector<34x1xf32>
      %cst_16 = arith.constant 9.99999974E-6 : f32
      %32 = vector.broadcast %cst_16 : f32 to vector<34x1xf32>
      %33 = arith.addf %31, %32 : vector<34x1xf32>
      %34 = math.rsqrt %33 : vector<34x1xf32>
      %35 = vector.broadcast %34 : vector<34x1xf32> to vector<34x32xf32>
      %36 = arith.mulf %26, %35 : vector<34x32xf32>
      %c0_17 = arith.constant 0 : index
      %c0_18 = arith.constant 0 : index
      %37 = vector.load %arg6[%c0_17, %c0_18] : memref<1x32xf32, #tpu.memory_space<vmem>>, vector<1x32xf32>
      %38 = vector.broadcast %37 : vector<1x32xf32> to vector<34x32xf32>
      %39 = arith.mulf %36, %38 : vector<34x32xf32>
      %c0_19 = arith.constant 0 : index
      %c0_20 = arith.constant 0 : index
      %40 = vector.load %arg7[%c0_19, %c0_20] : memref<1x32xf32, #tpu.memory_space<vmem>>, vector<1x32xf32>
      %41 = vector.broadcast %40 : vector<1x32xf32> to vector<34x32xf32>
      %42 = arith.addf %39, %41 : vector<34x32xf32>
      %43 = arith.truncf %42 : vector<34x32xf32> to vector<34x32xbf16>
      %c0_21 = arith.constant 0 : index
      %c0_22 = arith.constant 0 : index
      %44 = vector.load %arg9[%c0_21, %c0_22] : memref<34x32xbf16, #tpu.memory_space<vmem>>, vector<34x32xbf16>
      tpu.vector_store %arg9[%c0_21, %c0_22], %43 {strides = array<i32>} : memref<34x32xbf16, #tpu.memory_space<vmem>>, vector<34x32xbf16>,
    } else {
    }
    %c0 = arith.constant 0 : index
    %c0_1 = arith.constant 0 : index
    %3 = vector.load %arg9[%c0, %c0_1] : memref<34x32xbf16, #tpu.memory_space<vmem>>, vector<34x32xbf16>
    %c0_2 = arith.constant 0 : index
    %c0_3 = arith.constant 0 : index
    %4 = vector.load %arg4[%c0_2, %c0_3] : memref<32x128xbf16, #tpu.memory_space<vmem>>, vector<32x128xbf16>
    %cst = arith.constant dense<0.000000e+00> : vector<34x128xf32>
    %5 = tpu.matmul %3, %4, %cst {dimension_numbers = #tpu.dot_dimension_numbers<[1], [0], [0], [1], [0, 0, 1, 1], [], []>} : vector<34x32xbf16>, vector<32x128xbf16>, vector<34x128xf32> -> vector<34x128xf32>
    %c0_4 = arith.constant 0 : index
    %c0_5 = arith.constant 0 : index
    %6 = vector.load %arg5[%c0_4, %c0_5] : memref<1x128xf32, #tpu.memory_space<vmem>>, vector<1x128xf32>
    %7 = vector.broadcast %6 : vector<1x128xf32> to vector<34x128xf32>
    %8 = arith.addf %5, %7 : vector<34x128xf32>
    %cst_6 = arith.constant 1.702000e+00 : f32
    %9 = vector.broadcast %cst_6 : f32 to vector<34x128xf32>
    %10 = arith.mulf %9, %8 : vector<34x128xf32>
    %11 = arith.negf %10 : vector<34x128xf32>
    %12 = math.exp %11 : vector<34x128xf32>
    %cst_7 = arith.constant 1.000000e+00 : f32
    %13 = vector.broadcast %cst_7 : f32 to vector<34x128xf32>
    %14 = arith.addf %13, %12 : vector<34x128xf32>
    %15 = arith.divf %13, %14 : vector<34x128xf32>
    %16 = arith.mulf %8, %15 : vector<34x128xf32>
    %17 = arith.truncf %16 : vector<34x128xf32> to vector<34x128xbf16>
    %c0_8 = arith.constant 0 : index
    %c0_9 = arith.constant 0 : index
    %18 = vector.load %arg8[%c0_8, %c0_9] : memref<34x128xbf16, #tpu.memory_space<vmem>>, vector<34x128xbf16>
    tpu.vector_store %arg8[%c0_8, %c0_9], %17 {strides = array<i32>} : memref<34x128xbf16, #tpu.memory_space<vmem>>, vector<34x128xbf16>,
    return
  }
  func.func @transform_0(%arg0: i32, %arg1: i32, %arg2: i32) -> (i32, i32) {
    %c0_i32 = arith.constant 0 : i32
    return %arg0, %arg2 : i32, i32
  }
  func.func @transform_1(%arg0: i32, %arg1: i32, %arg2: i32) -> (i32, i32) {
    %c0_i32 = arith.constant 0 : i32
    return %arg2, %arg1 : i32, i32
  }
  func.func @transform_2(%arg0: i32, %arg1: i32, %arg2: i32) -> (i32, i32) {
    %c0_i32 = arith.constant 0 : i32
    %c0_i32_0 = arith.constant 0 : i32
    return %c0_i32, %arg1 : i32, i32
  }
  func.func @transform_3(%arg0: i32, %arg1: i32, %arg2: i32) -> (i32, i32) {
    %c0_i32 = arith.constant 0 : i32
    %c0_i32_0 = arith.constant 0 : i32
    return %c0_i32, %arg2 : i32, i32
  }
  func.func @transform_4(%arg0: i32, %arg1: i32, %arg2: i32) -> (i32, i32) {
    %c0_i32 = arith.constant 0 : i32
    %c0_i32_0 = arith.constant 0 : i32
    return %c0_i32, %arg2 : i32, i32
  }
  func.func @transform_5(%arg0: i32, %arg1: i32, %arg2: i32) -> (i32, i32) {
    %c0_i32 = arith.constant 0 : i32
    return %arg0, %arg1 : i32, i32
  }
}

module attributes {stable_mosaic.version = 11 : i64} {
  func.func @_fused_linear_kernel(%arg0: i32, %arg1: i32, %arg2: i32, %arg3: memref<34x32xbf16, #tpu.memory_space<vmem>>, %arg4: memref<32x32xbf16, #tpu.memory_space<vmem>>, %arg5: memref<1x32xf32, #tpu.memory_space<vmem>>, %arg6: memref<34x32xbf16, #tpu.memory_space<vmem>>, %arg7: memref<34x32xbf16, #tpu.memory_space<vmem>>) attributes {dimension_semantics = [#tpu.dimension_semantics<parallel>, #tpu.dimension_semantics<parallel>, #tpu.dimension_semantics<arbitrary>], iteration_bounds = array<i64: 1, 1, 1>, scalar_prefetch = 0 : i64, scratch_operands = 0 : i64, tpu.core_type = #tpu.core_type<tc>, window_params = [{transform_indices = @transform_0, window_bounds = array<i64: 34, 32>}, {transform_indices = @transform_1, window_bounds = array<i64: 32, 32>}, {transform_indices = @transform_2, window_bounds = array<i64: 1, 32>}, {transform_indices = @transform_3, window_bounds = array<i64: 34, 32>}, {transform_indices = @transform_4, window_bounds = array<i64: 34, 32>}]} {
    %c0 = arith.constant 0 : index
    %c0_0 = arith.constant 0 : index
    %0 = vector.load %arg3[%c0, %c0_0] : memref<34x32xbf16, #tpu.memory_space<vmem>>, vector<34x32xbf16>
    %c0_1 = arith.constant 0 : index
    %c0_2 = arith.constant 0 : index
    %1 = vector.load %arg4[%c0_1, %c0_2] : memref<32x32xbf16, #tpu.memory_space<vmem>>, vector<32x32xbf16>
    %cst = arith.constant dense<0.000000e+00> : vector<34x32xf32>
    %2 = tpu.matmul %0, %1, %cst {dimension_numbers = #tpu.dot_dimension_numbers<[1], [0], [0], [1], [0, 0, 1, 1], [], []>} : vector<34x32xbf16>, vector<32x32xbf16>, vector<34x32xf32> -> vector<34x32xf32>
    %c0_3 = arith.constant 0 : index
    %c0_4 = arith.constant 0 : index
    %3 = vector.load %arg5[%c0_3, %c0_4] : memref<1x32xf32, #tpu.memory_space<vmem>>, vector<1x32xf32>
    %4 = vector.broadcast %3 : vector<1x32xf32> to vector<34x32xf32>
    %5 = arith.addf %2, %4 : vector<34x32xf32>
    %c0_5 = arith.constant 0 : index
    %c0_6 = arith.constant 0 : index
    %6 = vector.load %arg6[%c0_5, %c0_6] : memref<34x32xbf16, #tpu.memory_space<vmem>>, vector<34x32xbf16>
    %7 = arith.extf %6 : vector<34x32xbf16> to vector<34x32xf32>
    %8 = arith.addf %5, %7 : vector<34x32xf32>
    %9 = arith.truncf %8 : vector<34x32xf32> to vector<34x32xbf16>
    %c0_7 = arith.constant 0 : index
    %c0_8 = arith.constant 0 : index
    %10 = vector.load %arg7[%c0_7, %c0_8] : memref<34x32xbf16, #tpu.memory_space<vmem>>, vector<34x32xbf16>
    tpu.vector_store %arg7[%c0_7, %c0_8], %9 {strides = array<i32>} : memref<34x32xbf16, #tpu.memory_space<vmem>>, vector<34x32xbf16>,
    return
  }
  func.func @transform_0(%arg0: i32, %arg1: i32, %arg2: i32) -> (i32, i32) {
    %c0_i32 = arith.constant 0 : i32
    return %arg0, %arg2 : i32, i32
  }
  func.func @transform_1(%arg0: i32, %arg1: i32, %arg2: i32) -> (i32, i32) {
    %c0_i32 = arith.constant 0 : i32
    return %arg2, %arg1 : i32, i32
  }
  func.func @transform_2(%arg0: i32, %arg1: i32, %arg2: i32) -> (i32, i32) {
    %c0_i32 = arith.constant 0 : i32
    %c0_i32_0 = arith.constant 0 : i32
    return %c0_i32, %arg1 : i32, i32
  }
  func.func @transform_3(%arg0: i32, %arg1: i32, %arg2: i32) -> (i32, i32) {
    %c0_i32 = arith.constant 0 : i32
    return %arg0, %arg1 : i32, i32
  }
  func.func @transform_4(%arg0: i32, %arg1: i32, %arg2: i32) -> (i32, i32) {
    %c0_i32 = arith.constant 0 : i32
    return %arg0, %arg1 : i32, i32
  }
}

module attributes {stable_mosaic.version = 11 : i64} {
  func.func @_fused_linear_kernel(%arg0: i32, %arg1: i32, %arg2: i32, %arg3: memref<34x128xbf16, #tpu.memory_space<vmem>>, %arg4: memref<128x32xbf16, #tpu.memory_space<vmem>>, %arg5: memref<1x32xf32, #tpu.memory_space<vmem>>, %arg6: memref<34x32xbf16, #tpu.memory_space<vmem>>, %arg7: memref<34x32xbf16, #tpu.memory_space<vmem>>) attributes {dimension_semantics = [#tpu.dimension_semantics<parallel>, #tpu.dimension_semantics<parallel>, #tpu.dimension_semantics<arbitrary>], iteration_bounds = array<i64: 1, 1, 1>, scalar_prefetch = 0 : i64, scratch_operands = 0 : i64, tpu.core_type = #tpu.core_type<tc>, window_params = [{transform_indices = @transform_0, window_bounds = array<i64: 34, 128>}, {transform_indices = @transform_1, window_bounds = array<i64: 128, 32>}, {transform_indices = @transform_2, window_bounds = array<i64: 1, 32>}, {transform_indices = @transform_3, window_bounds = array<i64: 34, 32>}, {transform_indices = @transform_4, window_bounds = array<i64: 34, 32>}]} {
    %c0 = arith.constant 0 : index
    %c0_0 = arith.constant 0 : index
    %0 = vector.load %arg3[%c0, %c0_0] : memref<34x128xbf16, #tpu.memory_space<vmem>>, vector<34x128xbf16>
    %c0_1 = arith.constant 0 : index
    %c0_2 = arith.constant 0 : index
    %1 = vector.load %arg4[%c0_1, %c0_2] : memref<128x32xbf16, #tpu.memory_space<vmem>>, vector<128x32xbf16>
    %cst = arith.constant dense<0.000000e+00> : vector<34x32xf32>
    %2 = tpu.matmul %0, %1, %cst {dimension_numbers = #tpu.dot_dimension_numbers<[1], [0], [0], [1], [0, 0, 1, 1], [], []>} : vector<34x128xbf16>, vector<128x32xbf16>, vector<34x32xf32> -> vector<34x32xf32>
    %c0_3 = arith.constant 0 : index
    %c0_4 = arith.constant 0 : index
    %3 = vector.load %arg5[%c0_3, %c0_4] : memref<1x32xf32, #tpu.memory_space<vmem>>, vector<1x32xf32>
    %4 = vector.broadcast %3 : vector<1x32xf32> to vector<34x32xf32>
    %5 = arith.addf %2, %4 : vector<34x32xf32>
    %c0_5 = arith.constant 0 : index
    %c0_6 = arith.constant 0 : index
    %6 = vector.load %arg6[%c0_5, %c0_6] : memref<34x32xbf16, #tpu.memory_space<vmem>>, vector<34x32xbf16>
    %7 = arith.extf %6 : vector<34x32xbf16> to vector<34x32xf32>
    %8 = arith.addf %5, %7 : vector<34x32xf32>
    %9 = arith.truncf %8 : vector<34x32xf32> to vector<34x32xbf16>
    %c0_7 = arith.constant 0 : index
    %c0_8 = arith.constant 0 : index
    %10 = vector.load %arg7[%c0_7, %c0_8] : memref<34x32xbf16, #tpu.memory_space<vmem>>, vector<34x32xbf16>
    tpu.vector_store %arg7[%c0_7, %c0_8], %9 {strides = array<i32>} : memref<34x32xbf16, #tpu.memory_space<vmem>>, vector<34x32xbf16>,
    return
  }
  func.func @transform_0(%arg0: i32, %arg1: i32, %arg2: i32) -> (i32, i32) {
    %c0_i32 = arith.constant 0 : i32
    return %arg0, %arg2 : i32, i32
  }
  func.func @transform_1(%arg0: i32, %arg1: i32, %arg2: i32) -> (i32, i32) {
    %c0_i32 = arith.constant 0 : i32
    return %arg2, %arg1 : i32, i32
  }
  func.func @transform_2(%arg0: i32, %arg1: i32, %arg2: i32) -> (i32, i32) {
    %c0_i32 = arith.constant 0 : i32
    %c0_i32_0 = arith.constant 0 : i32
    return %c0_i32, %arg1 : i32, i32
  }
  func.func @transform_3(%arg0: i32, %arg1: i32, %arg2: i32) -> (i32, i32) {
    %c0_i32 = arith.constant 0 : i32
    return %arg0, %arg1 : i32, i32
  }
  func.func @transform_4(%arg0: i32, %arg1: i32, %arg2: i32) -> (i32, i32) {
    %c0_i32 = arith.constant 0 : i32
    return %arg0, %arg1 : i32, i32
  }
}

module attributes {stable_mosaic.version = 11 : i64} {
  func.func @_fused_linear_kernel(%arg0: i32, %arg1: i32, %arg2: i32, %arg3: memref<2x32xbf16, #tpu.memory_space<vmem>>, %arg4: memref<32x16xbf16, #tpu.memory_space<vmem>>, %arg5: memref<1x32xf32, #tpu.memory_space<vmem>>, %arg6: memref<1x32xf32, #tpu.memory_space<vmem>>, %arg7: memref<2x16xbf16, #tpu.memory_space<vmem>>, %arg8: memref<2x32xbf16, #tpu.memory_space<vmem>>) attributes {dimension_semantics = [#tpu.dimension_semantics<parallel>, #tpu.dimension_semantics<arbitrary>, #tpu.dimension_semantics<arbitrary>], iteration_bounds = array<i64: 1, 1, 1>, scalar_prefetch = 0 : i64, scratch_operands = 1 : i64, tpu.core_type = #tpu.core_type<tc>, window_params = [{transform_indices = @transform_0, window_bounds = array<i64: 2, 32>}, {transform_indices = @transform_1, window_bounds = array<i64: 32, 16>}, {transform_indices = @transform_2, window_bounds = array<i64: 1, 32>}, {transform_indices = @transform_3, window_bounds = array<i64: 1, 32>}, {transform_indices = @transform_4, window_bounds = array<i64: 2, 16>}]} {
    %c0_i32 = arith.constant 0 : i32
    %0 = arith.cmpi eq, %arg1, %c0_i32 : i32
    %1 = arith.extui %0 : i1 to i32
    %c0_i32_0 = arith.constant 0 : i32
    %2 = arith.cmpi ne, %1, %c0_i32_0 : i32
    scf.if %2 {
      %c0_6 = arith.constant 0 : index
      %c0_7 = arith.constant 0 : index
      %8 = vector.load %arg3[%c0_6, %c0_7] : memref<2x32xbf16, #tpu.memory_space<vmem>>, vector<2x32xbf16>
      %9 = arith.extf %8 : vector<2x32xbf16> to vector<2x32xf32>
      %cst_8 = arith.constant dense<0.000000e+00> : vector<2xf32>
      %10 = vector.multi_reduction <add>, %9, %cst_8 [1] : vector<2x32xf32> to vector<2xf32>
      %11 = vector.shape_cast %10 : vector<2xf32> to vector<2x1xf32>
      %cst_9 = arith.constant 3.200000e+01 : f32
      %12 = vector.broadcast %cst_9 : f32 to vector<2x1xf32>
      %13 = arith.divf %11, %12 : vector<2x1xf32>
      %14 = vector.broadcast %13 : vector<2x1xf32> to vector<2x32xf32>
      %15 = arith.subf %9, %14 : vector<2x32xf32>
      %16 = arith.mulf %15, %15 : vector<2x32xf32>
      %cst_10 = arith.constant dense<0.000000e+00> : vector<2xf32>
      %17 = vector.multi_reduction <add>, %16, %cst_10 [1] : vector<2x32xf32> to vector<2xf32>
      %18 = vector.shape_cast %17 : vector<2xf32> to vector<2x1xf32>
      %cst_11 = arith.constant 3.200000e+01 : f32
      %19 = vector.broadcast %cst_11 : f32 to vector<2x1xf32>
      %20 = arith.divf %18, %19 : vector<2x1xf32>
      %cst_12 = arith.constant 9.99999974E-6 : f32
      %21 = vector.broadcast %cst_12 : f32 to vector<2x1xf32>
      %22 = arith.addf %20, %21 : vector<2x1xf32>
      %23 = math.rsqrt %22 : vector<2x1xf32>
      %24 = vector.broadcast %23 : vector<2x1xf32> to vector<2x32xf32>
      %25 = arith.mulf %15, %24 : vector<2x32xf32>
      %c0_13 = arith.constant 0 : index
      %c0_14 = arith.constant 0 : index
      %26 = vector.load %arg5[%c0_13, %c0_14] : memref<1x32xf32, #tpu.memory_space<vmem>>, vector<1x32xf32>
      %27 = vector.broadcast %26 : vector<1x32xf32> to vector<2x32xf32>
      %28 = arith.mulf %25, %27 : vector<2x32xf32>
      %c0_15 = arith.constant 0 : index
      %c0_16 = arith.constant 0 : index
      %29 = vector.load %arg6[%c0_15, %c0_16] : memref<1x32xf32, #tpu.memory_space<vmem>>, vector<1x32xf32>
      %30 = vector.broadcast %29 : vector<1x32xf32> to vector<2x32xf32>
      %31 = arith.addf %28, %30 : vector<2x32xf32>
      %32 = arith.truncf %31 : vector<2x32xf32> to vector<2x32xbf16>
      %c0_17 = arith.constant 0 : index
      %c0_18 = arith.constant 0 : index
      %33 = vector.load %arg8[%c0_17, %c0_18] : memref<2x32xbf16, #tpu.memory_space<vmem>>, vector<2x32xbf16>
      tpu.vector_store %arg8[%c0_17, %c0_18], %32 {strides = array<i32>} : memref<2x32xbf16, #tpu.memory_space<vmem>>, vector<2x32xbf16>,
    } else {
    }
    %c0 = arith.constant 0 : index
    %c0_1 = arith.constant 0 : index
    %3 = vector.load %arg8[%c0, %c0_1] : memref<2x32xbf16, #tpu.memory_space<vmem>>, vector<2x32xbf16>
    %c0_2 = arith.constant 0 : index
    %c0_3 = arith.constant 0 : index
    %4 = vector.load %arg4[%c0_2, %c0_3] : memref<32x16xbf16, #tpu.memory_space<vmem>>, vector<32x16xbf16>
    %cst = arith.constant dense<0.000000e+00> : vector<2x16xf32>
    %5 = tpu.matmul %3, %4, %cst {dimension_numbers = #tpu.dot_dimension_numbers<[1], [0], [0], [1], [0, 0, 1, 1], [], []>} : vector<2x32xbf16>, vector<32x16xbf16>, vector<2x16xf32> -> vector<2x16xf32>
    %6 = arith.truncf %5 : vector<2x16xf32> to vector<2x16xbf16>
    %c0_4 = arith.constant 0 : index
    %c0_5 = arith.constant 0 : index
    %7 = vector.load %arg7[%c0_4, %c0_5] : memref<2x16xbf16, #tpu.memory_space<vmem>>, vector<2x16xbf16>
    tpu.vector_store %arg7[%c0_4, %c0_5], %6 {strides = array<i32>} : memref<2x16xbf16, #tpu.memory_space<vmem>>, vector<2x16xbf16>,
    return
  }
  func.func @transform_0(%arg0: i32, %arg1: i32, %arg2: i32) -> (i32, i32) {
    %c0_i32 = arith.constant 0 : i32
    return %arg0, %arg2 : i32, i32
  }
  func.func @transform_1(%arg0: i32, %arg1: i32, %arg2: i32) -> (i32, i32) {
    %c0_i32 = arith.constant 0 : i32
    return %arg2, %arg1 : i32, i32
  }
  func.func @transform_2(%arg0: i32, %arg1: i32, %arg2: i32) -> (i32, i32) {
    %c0_i32 = arith.constant 0 : i32
    %c0_i32_0 = arith.constant 0 : i32
    return %c0_i32, %arg2 : i32, i32
  }
  func.func @transform_3(%arg0: i32, %arg1: i32, %arg2: i32) -> (i32, i32) {
    %c0_i32 = arith.constant 0 : i32
    %c0_i32_0 = arith.constant 0 : i32
    return %c0_i32, %arg2 : i32, i32
  }
  func.func @transform_4(%arg0: i32, %arg1: i32, %arg2: i32) -> (i32, i32) {
    %c0_i32 = arith.constant 0 : i32
    return %arg0, %arg1 : i32, i32
  }
}

</mosaic_0001>

<bundles_post_ra>
// kernel: vision_transformer.14
= control target key start
LH: loop header
LB: loop body
LE: loop exit
PB: predicated region body
PF: predicated region fallthrough
CT: control target
= control target key end

     0   :  { %vm24_vm0 = vcmask 261120   ;;  %vm37_vm1 = vcmask 254976   ;;  %vm137_vm2 = vcmask 257024   ;;  %vm142_vm3 = vcmask 253952   ;;  %s243_s0 = inlined_call_operand.vmem [shape: bf16[34,32], index: 0, kind: input, shape index: {}]   ;;  %s244_s1 = inlined_call_operand.vmem [shape: f32[1,32], index: 1, kind: input, shape index: {}]   ;;  %s245_s2 = inlined_call_operand.vmem [shape: f32[1,32], index: 2, kind: input, shape index: {}]   ;;  %s246_s3 = inlined_call_operand.vmem [shape: bf16[34,32], index: 3, kind: output, shape index: {}]  }
   0x1   :  { %v161_v0 = vld [vmem:[%s243_s0] sm:$0xff]   ;;  %v168_v1 = vld [vmem:[%s243_s0 + $0x8] sm:$0xff]   ;;  %v18_v6 = vld [vmem:[%s243_s0 + $0x10] sm:$0x1] }
   0x2   :  { %v162_v2 = vunpack.c.l.bf16 %v161_v0  ;;  %v166_v3 = vunpack.c.l.bf16 %v168_v1  ;;  %v163_v4 = vunpack.c.h.bf16 %v161_v0  ;;  %v167_v5 = vunpack.c.h.bf16 %v168_v1  ;;  %v148_v54 = vld [vmem:[%s244_s1] ss:$0 sm:$0xff] }
   0x3   :  { %v23_v11 = vunpack.c.l.bf16 %v18_v6  ;;  %v149_v56 = vld [vmem:[%s245_s2] ss:$0 sm:$0xff] }
   0x4   :  { %v25_v7 = vsel %vm24_vm0, %v162_v2, 0.0  ;;  %v31_v8 = vsel %vm24_vm0, %v166_v3, 0.0  ;;  %v28_v9 = vsel %vm24_vm0, %v163_v4, 0.0  ;;  %v34_v10 = vsel %vm24_vm0, %v167_v5, 0.0 }
   0x5   :  { %26 = vadd.xlane.f32.xlu0 %v25_v7  ;;  %32 = vadd.xlane.f32.xlu1 %v31_v8  ;;  %v38_v12 = vsel %vm37_vm1, %v23_v11, 0.0 }
   0x9   :  { %29 = vadd.xlane.f32.xlu0 %v28_v9  ;;  %35 = vadd.xlane.f32.xlu1 %v34_v10 }
   0xd   :  { %39 = vadd.xlane.f32.xlu0 %v38_v12 }
  0x92   :  { %v27_v13 = vpop.xlane.xlu0 %26  ;;  %v33_v14 = vpop.xlane.xlu1 %32 }
  0x93   :  { %v42_v15 = vmul.f32 0.03125, %v27_v13  ;;  %v44_v16 = vmul.f32 0.03125, %v33_v14 }
  0x95   :  { %v47_v17 = vsub.f32 %v162_v2, %v42_v15  ;;  %v49_v18 = vsub.f32 %v166_v3, %v44_v16 }
  0x96   :  { %v30_v19 = vpop.xlane.xlu0 %29  ;;  %v36_v20 = vpop.xlane.xlu1 %35 }
  0x97   :  { %v43_v21 = vmul.f32 0.03125, %v30_v19  ;;  %v45_v22 = vmul.f32 0.03125, %v36_v20  ;;  %v52_v23 = vmul.f32 %v47_v17, %v47_v17  ;;  %v54_v24 = vmul.f32 %v49_v18, %v49_v18 }
  0x99   :  { %v48_v25 = vsub.f32 %v163_v4, %v43_v21  ;;  %v50_v26 = vsub.f32 %v167_v5, %v45_v22  ;;  %v57_v27 = vsel %vm24_vm0, %v52_v23, 0.0  ;;  %v63_v30 = vsel %vm24_vm0, %v54_v24, 0.0 }
  0x9a   :  { %58 = vadd.xlane.f32.xlu1 %v57_v27  ;;  %v40_v28 = vpop.xlane.xlu0 %39 }
  0x9b   :  { %v46_v29 = vmul.f32 0.03125, %v40_v28  ;;  %v53_v31 = vmul.f32 %v48_v25, %v48_v25  ;;  %v55_v32 = vmul.f32 %v50_v26, %v50_v26 }
  0x9d   :  { %v51_v33 = vsub.f32 %v23_v11, %v46_v29  ;;  %v60_v34 = vsel %vm24_vm0, %v53_v31, 0.0  ;;  %v66_v35 = vsel %vm24_vm0, %v55_v32, 0.0 }
  0x9e   :  { %64 = vadd.xlane.f32.xlu1 %v63_v30  ;;  %61 = vadd.xlane.f32.xlu0 %v60_v34 }
  0x9f   :  { %v56_v36 = vmul.f32 %v51_v33, %v51_v33 }
  0xa1   :  { %v69_v37 = vsel %vm37_vm1, %v56_v36, 0.0 }
  0xa2   :  { %67 = vadd.xlane.f32.xlu0 %v66_v35  ;;  %70 = vadd.xlane.f32.xlu1 %v69_v37 }
 0x127   :  { %v59_v38 = vpop.xlane.xlu1 %58 }
 0x128   :  { %v72_v39 = vmul.f32 0.03125, %v59_v38 }
 0x12a   :  { %v77_v40 = vadd.f32 1e-05, %v72_v39 }
 0x12b   :  { %v65_v41 = vpop.xlane.xlu1 %64  ;;  %v62_v42 = vpop.xlane.xlu0 %61 }
 0x12c   :  { %169 = vrsqrt.f32 %v77_v40  ;;  %v74_v43 = vmul.f32 0.03125, %v65_v41  ;;  %v73_v44 = vmul.f32 0.03125, %v62_v42 }
 0x12e   :  { %v79_v45 = vadd.f32 1e-05, %v74_v43  ;;  %v78_v46 = vadd.f32 1e-05, %v73_v44 }
 0x12f   :  { %v71_v47 = vpop.xlane.xlu1 %70  ;;  %v68_v48 = vpop.xlane.xlu0 %67 }
 0x130   :  { %171 = vrsqrt.f32 %v79_v45  ;;  %v76_v49 = vmul.f32 0.03125, %v71_v47  ;;  %v75_v50 = vmul.f32 0.03125, %v68_v48 }
 0x131   :  { %173 = vrsqrt.f32 %v78_v46 }
 0x132   :  { %v81_v51 = vadd.f32 1e-05, %v76_v49  ;;  %v80_v52 = vadd.f32 1e-05, %v75_v50 }
 0x134   :  { %175 = vrsqrt.f32 %v81_v51 }
 0x135   :  { %177 = vrsqrt.f32 %v80_v52 }
 0x136   :  { %v170_v53 = vpop.eup %169 }
 0x137   :  { %v87_v55 = vmul.f32 %v170_v53, %v47_v17 }
 0x139   :  { %v99_v57 = vmul.f32 %v148_v54, %v87_v55 }
 0x13a   :  { %v172_v58 = vpop.eup %171 }
 0x13b   :  { %v174_v59 = vpop.eup %173  ;;  %v111_v60 = vadd.f32 %v149_v56, %v99_v57  ;;  %v89_v61 = vmul.f32 %v172_v58, %v49_v18 }
 0x13c   :  { %v88_v62 = vmul.f32 %v174_v59, %v48_v25 }
 0x13d   :  { %v155_v63 = vpack.c.bf16 %v111_v60, %v111_v60  ;;  %v101_v0 = vmul.f32 %v148_v54, %v89_v61 }
 0x13e   :  { %v176_v1 = vpop.eup %175  ;;  %v100_v2 = vmul.f32 %v148_v54, %v88_v62 }
 0x13f   :  { %v178_v3 = vpop.eup %177  ;;  %138 = vst.msk [vmem:[%s246_s3] sm:$0xf] %vm137_vm2, %v155_v63  ;;  %v113_v4 = vadd.f32 %v149_v56, %v101_v0  ;;  %v91_v5 = vmul.f32 %v176_v1, %v51_v33 }
 0x140   :  { %v112_v6 = vadd.f32 %v149_v56, %v100_v2  ;;  %v90_v7 = vmul.f32 %v178_v3, %v50_v26 }
 0x141   :  { %v157_v8 = vpack.c.bf16 %v113_v4, %v113_v4  ;;  %v103_v9 = vmul.f32 %v148_v54, %v91_v5 }
 0x142   :  { %v156_v10 = vpack.c.bf16 %v112_v6, %v112_v6  ;;  %v102_v11 = vmul.f32 %v148_v54, %v90_v7 }
 0x143   :  { %140 = vst.msk [vmem:[%s246_s3 + $0x8] sm:$0xf] %vm137_vm2, %v157_v8  ;;  %v115_v12 = vadd.f32 %v149_v56, %v103_v9 }
 0x144   :  { %139 = vst.msk [vmem:[%s246_s3 + $0x4] sm:$0xf] %vm137_vm2, %v156_v10  ;;  %v114_v13 = vadd.f32 %v149_v56, %v102_v11 }
 0x145   :  { %v159_v14 = vpack.c.bf16 %v115_v12, %v115_v12 }
 0x146   :  { %v158_v15 = vpack.c.bf16 %v114_v13, %v114_v13 }
 0x147   :  { %143 = vst.msk [vmem:[%s246_s3 + $0x10] sm:$0x1] %vm142_vm3, %v159_v14 }
 0x148   :  { %141 = vst.msk [vmem:[%s246_s3 + $0xc] sm:$0xf] %vm137_vm2, %v158_v15 }

// kernel: vision_transformer.13
= control target key start
LH: loop header
LB: loop body
LE: loop exit
PB: predicated region body
PF: predicated region fallthrough
CT: control target
= control target key end

     0   :  { %vm50_vm0 = vcmask 392192   ;;  %vm122_vm1 = vcmask 257024   ;;  %s208_s1 = inlined_call_operand.vmem [shape: bf16[48,32], index: 1, kind: input, shape index: {}]   ;;  %s209_s0 = inlined_call_operand.vmem [shape: bf16[32,48], index: 0, kind: input, shape index: {}]   ;;  %s210_s2 = inlined_call_operand.vmem [shape: bf16[32,32], index: 2, kind: output, shape index: {}]  }
   0x1   :  { %v161_v0 = vld [vmem:[%s208_s1] sm:$0xff]   ;;  %v162_v1 = vld [vmem:[%s208_s1 + $0x8] sm:$0xff]   ;;  %v163_v3 = vld [vmem:[%s208_s1 + $0x10] sm:$0xff]  }
   0x2   :  { %151 = vmatprep.subr.bf16.mxu0 %v161_v0  ;;  %v164_v2 = vld [vmem:[%s209_s0] sm:$0xff]   ;;  %v165_v4 = vld [vmem:[%s209_s0 + $0x8] sm:$0xff]  }
   0x3   :  { %152 = vmatpush3.bf16.msra.mxu0 %v161_v0  ;;  %157 = vmatprep.mubr.msk.bf16.mxu0 %vm50_vm0, %v164_v2 }
   0x4   :  { %153 = vmatprep.subr.bf16.mxu0 %v162_v1 }
   0x7   :  { %154 = vmatpush3.bf16.msra.mxu0 %v162_v1 }
   0x8   :  { %155 = vmatprep.subr.bf16.mxu0 %v163_v3 }
   0xb   :  { %156 = vmatpush3.bf16.msra.mxu0 %v163_v3 }
   0xe   :  { %158 = vmatmul.mubr.msk.bf16.vlgmr.msra.gmra.mrb[0].mxu0 %vm50_vm0, %v165_v4 }
  0xe1   :  { %v159_v5 = vpop.f32.mrb[0].mxu0 }
  0xe2   :  { %v144_v6 = vpack.c.bf16 %v159_v5, %v159_v5  ;;  %v91_v7 = vpop.f32.mrb[1].mxu0 }
  0xe3   :  { %v142_v8 = vpack.c.bf16 %v91_v7, %v91_v7  ;;  %v160_v9 = vpop.f32.mrb[2].mxu0 }
  0xe4   :  { %125 = vst.msk [vmem:[%s210_s2 + $0x8] sm:$0xf] %vm122_vm1, %v144_v6  ;;  %v145_v10 = vpack.c.bf16 %v160_v9, %v160_v9  ;;  %v94_v11 = vpop.f32.mrb[3].mxu0 }
  0xe5   :  { %123 = vst.msk [vmem:[%s210_s2] sm:$0xf] %vm122_vm1, %v142_v8  ;;  %v143_v12 = vpack.c.bf16 %v94_v11, %v94_v11 }
  0xe6   :  { %126 = vst.msk [vmem:[%s210_s2 + $0xc] sm:$0xf] %vm122_vm1, %v145_v10 }
  0xe7   :  { %124 = vst.msk [vmem:[%s210_s2 + $0x4] sm:$0xf] %vm122_vm1, %v143_v12 }

// kernel: vision_transformer.15
= control target key start
LH: loop header
LB: loop body
LE: loop exit
PB: predicated region body
PF: predicated region fallthrough
CT: control target
= control target key end

     0   :  { %vm35_vm0 = vcmask 261120   ;;  %vm48_vm1 = vcmask 254976   ;;  %v376_v39 = vmov 0.0   ;;  %vm377_vm2 = vmmov 0   ;;  %s503_s0 = inlined_call_operand.vmem [shape: bf16[34,32], index: 0, kind: input, shape index: {}]   ;;  %s504_s1 = inlined_call_operand.vmem [shape: bf16[32,96], index: 1, kind: input, shape index: {}]   ;;  %s505_s3 = inlined_call_operand.vmem [shape: f32[1,32], index: 3, kind: input, shape index: {}]   ;;  %s506_s4 = inlined_call_operand.vmem [shape: f32[1,32], index: 4, kind: input, shape index: {}]   ;;  %s507_s2 = inlined_call_operand.vmem [shape: f32[1,96], index: 2, kind: input, shape index: {}]   ;;  %s508_s5 = inlined_call_operand.vmem [shape: bf16[34,96], index: 5, kind: output, shape index: {}]  }
   0x1   :  { %v333_v0 = vld [vmem:[%s503_s0 + $0x8] sm:$0xff]   ;;  %v326_v1 = vld [vmem:[%s503_s0] sm:$0xff]   ;;  %v29_v5 = vld [vmem:[%s503_s0 + $0x10] sm:$0x1]  ;;  %355 = vmatprep.subr.bf16.mxu1 %v376_v39  ;;  %339 = vmatprep.subr.bf16.mxu0 %v376_v39  ;;  %vm148_vm3 = vcmask 257024   ;;  %vm153_vm4 = vcmask 253952  }
   0x2   :  { %v331_v2 = vunpack.c.l.bf16 %v333_v0  ;;  %v332_v3 = vunpack.c.h.bf16 %v333_v0  ;;  %v327_v4 = vunpack.c.l.bf16 %v326_v1  ;;  %v328_v6 = vunpack.c.h.bf16 %v326_v1  ;;  %v361_v38 = vld [vmem:[%s504_s1] sm:$0xff]   ;;  %v362_v40 = vld [vmem:[%s504_s1 + $0x8] sm:$0xff]   ;;  %347 = vmatprep.mubr.msk.bf16.mxu1 %vm377_vm2, %v376_v39  ;;  %343 = vmatprep.mubr.msk.bf16.mxu0 %vm377_vm2, %v376_v39 }
   0x3   :  { %v34_v10 = vunpack.c.l.bf16 %v29_v5  ;;  %357 = vmatpush3.bf16.msra.mxu1 %v361_v38  ;;  %340 = vmatpush3.bf16.msra.mxu0 %v361_v38  ;;  %v294_v57 = vld [vmem:[%s505_s3] ss:$0 sm:$0xff]  ;;  %vm283_vm5 = vcmask 781312   ;;  %vm288_vm6 = vcmask 778240  }
   0x4   :  { %v42_v7 = vsel %vm35_vm0, %v331_v2, 0.0  ;;  %v36_v8 = vsel %vm35_vm0, %v327_v4, 0.0  ;;  %v45_v9 = vsel %vm35_vm0, %v332_v3, 0.0  ;;  %v39_v11 = vsel %vm35_vm0, %v328_v6, 0.0  ;;  %356 = vmatprep.subr.bf16.mxu1 %v376_v39  ;;  %341 = vmatprep.subr.bf16.mxu0 %v376_v39  ;;  %v295_v59 = vld [vmem:[%s506_s4] ss:$0 sm:$0xff] }
   0x5   :  { %43 = vadd.xlane.f32.xlu0 %v42_v7  ;;  %37 = vadd.xlane.f32.xlu1 %v36_v8  ;;  %v49_v12 = vsel %vm48_vm1, %v34_v10, 0.0 }
   0x7   :  { %358 = vmatpush3.bf16.msra.mxu1 %v362_v40  ;;  %342 = vmatpush3.bf16.msra.mxu0 %v362_v40 }
   0x9   :  { %46 = vadd.xlane.f32.xlu0 %v45_v9  ;;  %40 = vadd.xlane.f32.xlu1 %v39_v11 }
   0xd   :  { %50 = vadd.xlane.f32.xlu0 %v49_v12 }
  0x92   :  { %v44_v13 = vpop.xlane.xlu0 %43  ;;  %v38_v14 = vpop.xlane.xlu1 %37 }
  0x93   :  { %v55_v15 = vmul.f32 0.03125, %v44_v13  ;;  %v53_v16 = vmul.f32 0.03125, %v38_v14 }
  0x95   :  { %v422_v17 = vsub.f32 %v331_v2, %v55_v15  ;;  %v424_v18 = vsub.f32 %v327_v4, %v53_v16 }
  0x96   :  { %v47_v19 = vpop.xlane.xlu0 %46  ;;  %v41_v20 = vpop.xlane.xlu1 %40 }
  0x97   :  { %v56_v21 = vmul.f32 0.03125, %v47_v19  ;;  %v65_v22 = vmul.f32 %v422_v17, %v422_v17  ;;  %v54_v23 = vmul.f32 0.03125, %v41_v20  ;;  %v63_v24 = vmul.f32 %v424_v18, %v424_v18 }
  0x99   :  { %v430_v25 = vsub.f32 %v332_v3, %v56_v21  ;;  %v74_v26 = vsel %vm35_vm0, %v65_v22, 0.0  ;;  %v433_v27 = vsub.f32 %v328_v6, %v54_v23  ;;  %v68_v31 = vsel %vm35_vm0, %v63_v24, 0.0  ;;  %v301_v22 = vld [vmem:[%s507_s2] ss:$0 sm:$0xff] }
  0x9a   :  { %v51_v28 = vpop.xlane.xlu0 %50  ;;  %75 = vadd.xlane.f32.xlu1 %v74_v26 }
  0x9b   :  { %v57_v29 = vmul.f32 0.03125, %v51_v28  ;;  %v66_v30 = vmul.f32 %v430_v25, %v430_v25  ;;  %v64_v32 = vmul.f32 %v433_v27, %v433_v27 }
  0x9d   :  { %v440_v33 = vsub.f32 %v34_v10, %v57_v29  ;;  %v77_v34 = vsel %vm35_vm0, %v66_v30, 0.0  ;;  %v71_v36 = vsel %vm35_vm0, %v64_v32, 0.0 }
  0x9e   :  { %78 = vadd.xlane.f32.xlu0 %v77_v34  ;;  %69 = vadd.xlane.f32.xlu1 %v68_v31 }
  0x9f   :  { %v67_v35 = vmul.f32 %v440_v33, %v440_v33 }
  0xa1   :  { %v80_v37 = vsel %vm48_vm1, %v67_v35, 0.0 }
  0xa2   :  { %81 = vadd.xlane.f32.xlu1 %v80_v37  ;;  %72 = vadd.xlane.f32.xlu0 %v71_v36 }
 0x127   :  { %v76_v41 = vpop.xlane.xlu1 %75 }
 0x128   :  { %v85_v42 = vmul.f32 0.03125, %v76_v41 }
 0x12a   :  { %v90_v43 = vadd.f32 1e-05, %v85_v42 }
 0x12b   :  { %v79_v44 = vpop.xlane.xlu0 %78  ;;  %v70_v45 = vpop.xlane.xlu1 %69 }
 0x12c   :  { %366 = vrsqrt.f32 %v90_v43  ;;  %v86_v46 = vmul.f32 0.03125, %v79_v44  ;;  %v83_v47 = vmul.f32 0.03125, %v70_v45 }
 0x12e   :  { %v91_v48 = vadd.f32 1e-05, %v86_v46  ;;  %v88_v49 = vadd.f32 1e-05, %v83_v47 }
 0x12f   :  { %v73_v50 = vpop.xlane.xlu0 %72  ;;  %v82_v51 = vpop.xlane.xlu1 %81 }
 0x130   :  { %368 = vrsqrt.f32 %v91_v48  ;;  %v84_v52 = vmul.f32 0.03125, %v73_v50  ;;  %v87_v53 = vmul.f32 0.03125, %v82_v51 }
 0x131   :  { %370 = vrsqrt.f32 %v88_v49 }
 0x132   :  { %v89_v54 = vadd.f32 1e-05, %v84_v52  ;;  %v92_v55 = vadd.f32 1e-05, %v87_v53 }
 0x134   :  { %372 = vrsqrt.f32 %v89_v54 }
 0x135   :  { %374 = vrsqrt.f32 %v92_v55 }
 0x136   :  { %v367_v56 = vpop.eup %366 }
 0x137   :  { %v100_v58 = vmul.f32 %v367_v56, %v422_v17 }
 0x139   :  { %v112_v60 = vmul.f32 %v294_v57, %v100_v58 }
 0x13a   :  { %v369_v61 = vpop.eup %368 }
 0x13b   :  { %v371_v62 = vpop.eup %370  ;;  %v124_v63 = vadd.f32 %v295_v59, %v112_v60  ;;  %v101_v0 = vmul.f32 %v369_v61, %v430_v25 }
 0x13c   :  { %v98_v1 = vmul.f32 %v371_v62, %v424_v18 }
 0x13d   :  { %v317_v2 = vpack.c.bf16 %v124_v63, %v124_v63  ;;  %v113_v3 = vmul.f32 %v294_v57, %v101_v0 }
 0x13e   :  { %v373_v4 = vpop.eup %372  ;;  %v110_v5 = vmul.f32 %v294_v57, %v98_v1 }
 0x13f   :  { %v375_v6 = vpop.eup %374  ;;  %151 = vst.msk [vmem:[#allocation2 + $0x8] sm:$0xf] %vm148_vm3, %v317_v2  ;;  %v125_v7 = vadd.f32 %v295_v59, %v113_v3  ;;  %v99_v8 = vmul.f32 %v373_v4, %v433_v27 }
 0x140   :  { %v122_v9 = vadd.f32 %v295_v59, %v110_v5  ;;  %v102_v10 = vmul.f32 %v375_v6, %v440_v33 }
 0x141   :  { %v318_v11 = vpack.c.bf16 %v125_v7, %v125_v7  ;;  %v111_v12 = vmul.f32 %v294_v57, %v99_v8 }
 0x142   :  { %v315_v13 = vpack.c.bf16 %v122_v9, %v122_v9  ;;  %v114_v14 = vmul.f32 %v294_v57, %v102_v10 }
 0x143   :  { %152 = vst.msk [vmem:[#allocation2 + $0xc] sm:$0xf] %vm148_vm3, %v318_v11  ;;  %v123_v15 = vadd.f32 %v295_v59, %v111_v12 }
 0x144   :  { %149 = vst.msk [vmem:[#allocation2] sm:$0xf] %vm148_vm3, %v315_v13  ;;  %v126_v16 = vadd.f32 %v295_v59, %v114_v14 }
 0x145   :  { %v316_v17 = vpack.c.bf16 %v123_v15, %v123_v15 }
 0x146   :  { %v319_v18 = vpack.c.bf16 %v126_v16, %v126_v16 }
 0x147   :  { %150 = vst.msk [vmem:[#allocation2 + $0x4] sm:$0xf] %vm148_vm3, %v316_v17 }
 0x148   :  { %154 = vst.msk [vmem:[#allocation2 + $0x10] sm:$0x1] %vm153_vm4, %v319_v18 }
 0x14a   :  { %v363_v19 = vld [vmem:[#allocation2 + $0x8] sm:$0xff]  }
 0x14b   :  { %348 = vmatmul.mubr.msk.bf16.vlgmr.msra.gmra.mrb[0].mxu1 %vm35_vm0, %v363_v19 }
 0x14c   :  { %351 = vmatprep.mubr.msk.bf16.mxu1 %vm377_vm2, %v376_v39 }
 0x14e   :  { %v364_v20 = vld [vmem:[#allocation2] sm:$0xff]  }
 0x14f   :  { %344 = vmatmul.mubr.msk.bf16.vlgmr.msra.gmra.mrb[0].mxu0 %vm35_vm0, %v364_v20  ;;  %v365_v21 = vld [vmem:[#allocation2 + $0x10] ss:$0 sps:$4 sm:$0x11]  }
 0x153   :  { %352 = vmatmul.mubr.msk.bf16.gmra.mrb[4].mxu1 %vm35_vm0, %v365_v21 }
 0x21e   :  { %v248_v23 = vpop.f32.mrb[0].mxu1 }
 0x21f   :  { %v249_v24 = vadd.f32 %v301_v22, %v248_v23  ;;  %v349_v25 = vpop.f32.mrb[1].mxu1 }
 0x220   :  { %v251_v26 = vpop.f32.mrb[2].mxu1 }
 0x221   :  { %v322_v27 = vpack.c.bf16 %v249_v24, %v249_v24  ;;  %v252_v28 = vadd.f32 %v301_v22, %v251_v26  ;;  %v350_v29 = vpop.f32.mrb[3].mxu1 }
 0x222   :  { %v240_v30 = vpop.f32.mrb[0].mxu0 }
 0x223   :  { %286 = vst.msk [vmem:[%s508_s5 + $0x8] sm:$0xf] %vm283_vm5, %v322_v27  ;;  %v323_v31 = vpack.c.bf16 %v252_v28, %v252_v28  ;;  %v241_v32 = vadd.f32 %v301_v22, %v240_v30  ;;  %v345_v33 = vpop.f32.mrb[1].mxu0 }
 0x224   :  { %v243_v34 = vpop.f32.mrb[2].mxu0 }
 0x225   :  { %287 = vst.msk [vmem:[%s508_s5 + $0xc] sm:$0xf] %vm283_vm5, %v323_v31  ;;  %v320_v35 = vpack.c.bf16 %v241_v32, %v241_v32  ;;  %v244_v36 = vadd.f32 %v301_v22, %v243_v34  ;;  %v346_v37 = vpop.f32.mrb[3].mxu0 }
 0x226   :  { %v256_v38 = vpop.f32.mrb[4].mxu1 }
 0x227   :  { %284 = vst.msk [vmem:[%s508_s5] sm:$0xf] %vm283_vm5, %v320_v35  ;;  %v321_v39 = vpack.c.bf16 %v244_v36, %v244_v36  ;;  %v257_v40 = vadd.f32 %v301_v22, %v256_v38  ;;  %v353_v41 = vpop.f32.mrb[5].mxu1 }
 0x228   :  { %v259_v42 = vpop.f32.mrb[6].mxu1 }
 0x229   :  { %285 = vst.msk [vmem:[%s508_s5 + $0x4] sm:$0xf] %vm283_vm5, %v321_v39  ;;  %v324_v43 = vpack.c.bf16 %v257_v40, %v257_v40  ;;  %v354_v44 = vpop.f32.mrb[7].mxu1 }
 0x22b   :  { %289 = vst.msk [vmem:[%s508_s5 + $0x10] sm:$0x1] %vm288_vm6, %v324_v43 }

// kernel: vision_transformer.16
= control target key start
LH: loop header
LB: loop body
LE: loop exit
PB: predicated region body
PF: predicated region fallthrough
CT: control target
= control target key end

     0   :  { %s1211_s6 = smov 0   ;;  %s1363_s0 = inlined_call_operand.vmem [shape: bf16[2,17,96], index: 0, kind: input, shape index: {}]   ;;  %s1364_s1 = inlined_call_operand.vmem [shape: bf16[2,17,32], index: 1, kind: output, shape index: {}]  }
   0x1 LB: > { %s949_s7 = sadd.s32 4294967295, %s1184_s6   ;;  %p953_p0 = scmp.ge.s32.totalorder %s1184_s6, 1  ;;  %s1184_s6 = sphi %s1211_s6, %s11_s6  }
   0x2   : > { %p87_p1 = scmp.lt.s32.totalorder %s1184_s6, 3 }
   0x4   : > { %p88_p2 = pnand %p953_p0, %p87_p1 }
   0x5   : > { %p107_p3 = scmp.lt.s32.totalorder (!%p88_p2), %s949_s7, 1  ;;  %vm133_vm0 = vcmask (!%p88_p2), 64512   ;;  %s1186_s12 = smov (!%p88_p2), 96   ;;  %vm201_vm1 = vcmask (!%p88_p2), 131072   ;;  %vm194_vm2 = vcmask (!%p88_p2), 138240   ;;  %vm242_vm3 = vcmask (!%p88_p2), 1040384  }
   0x6   : > { %91 = sbr.rel (%p88_p2) target bundleno = 2682 (0xa7a), region = 24  ;;  %s1187_s13 = smov (!%p88_p2), 64   ;;  %v1190_v32 = vmov (!%p88_p2), 0   ;;  %vm312_vm4 = vcmask (!%p88_p2), 57344   ;;  %vm313_vm5 = vsmask.f32 (!%p88_p2), 256 }
   0x7   : > { %s1188_s14 = smov (!%p88_p2), 88   ;;  %s1189_s15 = smov (!%p88_p2), 120   ;;  %v1253_v33 = vsel (!%p88_p2), %vm242_vm3, 65535, %v1190_v32  ;;  %vm314_vm6 = vmand (!%p88_p2), %vm312_vm4, %vm313_vm5  ;;  %vm309_vm7 = vcmask (!%p88_p2), 60416   ;;  %vm505_vm8 = vcmask (!%p88_p2), 122944   ;;  %vm697_vm10 = vcmask (!%p88_p2), 188544  }
   0x8   : > { %s1191_s19 = smov (!%p88_p2), 56   ;;  %s1192_s20 = smov (!%p88_p2), 80   ;;  %vm506_vm9 = vmand (!%p88_p2), %vm505_vm8, %vm313_vm5  ;;  %vm502_vm11 = vcmask (!%p88_p2), 126016   ;;  %vm694_vm13 = vcmask (!%p88_p2), 191616   ;;  %vm889_vm14 = vcmask (!%p88_p2), 254144  }
   0x9   : > { %s1193_s21 = smov (!%p88_p2), 112   ;;  %s1194_s22 = smov (!%p88_p2), 48   ;;  %vm698_vm12 = vmand (!%p88_p2), %vm697_vm10, %vm313_vm5 }
   0xa   : > { %s1195_s23 = smov (!%p88_p2), 72   ;;  %s1196_s24 = smov (!%p88_p2), 104   ;;  %vm890_vm15 = vmand (!%p88_p2), %vm889_vm14, %vm313_vm5 }
   0xb   : > { %s1197_s25 = smov (!%p88_p2), 40   ;;  %s1198_s26 = smov (!%p88_p2), 8  }
   0xc   : > { %s1199_s27 = smov (!%p88_p2), 16   ;;  %s1200_s28 = smov (!%p88_p2), 24  }
   0xd   : > { %s1366_s7 = smov (!%p107_p3, %s949_s7), 1 }
   0xe   : > { %s1104_s8 = smul.u32 12, %s1366_s7 }
  0x10   : > { %s111_s11 = scalar_lea.vmem %s1363_s0, %s1104_s8  ;;  %s1269_s18 = scalar_lea.vmem %s1364_s1, %s1104_s8 }
  0x11   : > { %v1227_v0 = vld [vmem:[%s111_s11] sm:$0xff]   ;;  %v1230_v1 = vld [vmem:[%s111_s11 + $0x8] ss:$0 sps:$4 sm:$0x11]  }
  0x12   : > { %129 = vrot.lane.b32.xlu0 %v1227_v0, %s1186_s12  ;;  %1036 = vmatprep.mubr.msk.bf16.mxu0 %vm133_vm0, %v1227_v0  ;;  %v315_v51 = vld [vmem:[%s1269_s18 + $0x8] sm:$0x1] }
  0x16   : > { %131 = vrot.lane.b32.xlu0 %v1230_v1, %s1186_s12 }
  0x84   : > { %v130_v2 = vpop.permute.xlu0 %129 }
  0x85   : > { %1096 = vmatprep.subr.msk.bf16.mxu0 %vm133_vm0, %v130_v2  ;;  %v141_v3 = vsel %vm133_vm0, %v130_v2, 0 }
  0x86   : > { %1033 = vmatpush3.bf16.xpose.msra.mxu0 %v141_v3 }
  0x88   : > { %v132_v4 = vpop.permute.xlu0 %131 }
  0x89   : > { %1097 = vmatprep.subr.msk.bf16.mxu0 %vm133_vm0, %v132_v4  ;;  %v144_v5 = vsel %vm133_vm0, %v132_v4, 0 }
  0x8e   : > { %1035 = vmatpush3.bf16.xpose.msra.mxu0 %v144_v5 }
  0x95   : > { %1037 = vmatmul.mubr.msk.bf16.vlgmr.msra.gmra.mrb[0].mxu0 %vm133_vm0, %v1230_v1 }
 0x168   : > { %v1038_v6 = vpop.f32.mrb[0].mxu0 }
 0x169   : > { %v180_v7 = vpop.f32.mrb[1].mxu0  ;;  %v202_v8 = vsel %vm201_vm1, %v1038_v6, -inf }
 0x16a   : > { %203 = vmax.xlane.f32.xlu0 %v202_v8  ;;  %v1039_v9 = vpop.f32.mrb[2].mxu0  ;;  %v195_v10 = vsel %vm194_vm2, %v180_v7, -inf }
 0x16b   : > { %196 = vmax.xlane.f32.xlu1 %v195_v10  ;;  %v183_v11 = vpop.f32.mrb[3].mxu0 }
 0x16c   : > { %v198_v12 = vsel %vm194_vm2, %v183_v11, -inf }
 0x16f   : > { %199 = vmax.xlane.f32.xlu1 %v198_v12 }
 0x180   : > { %231 = vrot.lane.b32.xlu1 %v1227_v0, %s1187_s13  ;;  %322 = vrot.lane.b32.xlu0 %v1227_v0, %s1188_s14 }
 0x1f7   : > { %v204_v13 = vpop.xlane.xlu0 %203 }
 0x1f8   : > { %v207_v14 = vsub.f32 %v1038_v6, %v204_v13  ;;  %v197_v15 = vpop.xlane.xlu1 %196 }
 0x1f9   : > { %v205_v16 = vsub.f32 %v180_v7, %v197_v15 }
 0x1fa   : > { %v212_v17 = vmul.f32 1.442695, %v207_v14 }
 0x1fb   : > { %v208_v18 = vmul.f32 1.442695, %v205_v16  ;;  %v323_v36 = vpop.permute.xlu0 %322 }
 0x1fc   : > { %1130 = vpow2.f32 %v212_v17  ;;  %v200_v19 = vpop.xlane.xlu1 %199  ;;  %v333_v45 = vsel %vm133_vm0, %v323_v36, 0 }
 0x1fd   : > { %v206_v20 = vsub.f32 %v183_v11, %v200_v19  ;;  %1132 = vpow2.f32 %v208_v18 }
 0x1ff   : > { %v210_v21 = vmul.f32 1.442695, %v206_v20 }
 0x200   : > { %v232_v22 = vpop.permute.xlu1 %231 }
 0x201   : > { %1040 = vmatprep.subr.bf16.mxu1 %v232_v22  ;;  %1134 = vpow2.f32 %v210_v21 }
 0x202   : > { %1041 = vmatpush3.bf16.msra.mxu1 %v232_v22 }
 0x206   : > { %v1131_v23 = vpop.eup %1130 }
 0x207   : > { %v220_v24 = vsel %vm201_vm1, %v1131_v23, 0.0  ;;  %v1133_v25 = vpop.eup %1132 }
 0x208   : > { %221 = vadd.xlane.f32.xlu1 %v220_v24  ;;  %v214_v26 = vsel %vm194_vm2, %v1133_v25, 0.0 }
 0x20b   : > { %v1135_v27 = vpop.eup %1134 }
 0x20c   : > { %215 = vadd.xlane.f32.xlu1 %v214_v26  ;;  %v217_v28 = vsel %vm194_vm2, %v1135_v27, 0.0 }
 0x210   : > { %218 = vadd.xlane.f32.xlu1 %v217_v28 }
 0x221   : > { %233 = vrot.lane.b32.xlu1 %v1230_v1, %s1187_s13 }
 0x225   : > { %324 = vrot.lane.b32.xlu1 %v1230_v1, %s1188_s14 }
 0x229   : > { %318 = vrot.lane.b32.xlu1 %v1227_v0, %s1189_s15 }
 0x22d   : > { %320 = vrot.lane.b32.xlu1 %v1230_v1, %s1189_s15 }
 0x295   : > { %v222_v29 = vpop.xlane.xlu1 %221 }
 0x296   : > { %1136 = vrcp.f32 %v222_v29 }
 0x299   : > { %v216_v30 = vpop.xlane.xlu1 %215 }
 0x29a   : > { %1138 = vrcp.f32 %v216_v30 }
 0x29d   : > { %v219_v31 = vpop.xlane.xlu1 %218 }
 0x29e   : > { %1140 = vrcp.f32 %v219_v31 }
 0x2a0   : > { %v1137_v37 = vpop.eup %1136 }
 0x2a1   : > { %v234_v34 = vpop.permute.xlu1 %233  ;;  %v228_v41 = vmul.f32 %v1137_v37, %v1131_v23 }
 0x2a2   : > { %v246_v35 = vand.u32 %v1253_v33, %v234_v34 }
 0x2a3   : > { %v230_v46 = vpack.c.bf16 %v228_v41, %v228_v41 }
 0x2a4   : > { %1042 = vmatprep.subr.bf16.mxu1 %v246_v35  ;;  %v1139_v38 = vpop.eup %1138 }
 0x2a5   : > { %1043 = vmatpush3.bf16.msra.mxu1 %v246_v35  ;;  %v325_v39 = vpop.permute.xlu1 %324  ;;  %v226_v42 = vmul.f32 %v1139_v38, %v1133_v25 }
 0x2a6   : > { %1098 = vmatprep.subr.msk.bf16.mxu1 %vm133_vm0, %v323_v36  ;;  %v336_v48 = vsel %vm133_vm0, %v325_v39, 0 }
 0x2a8   : > { %v1141_v40 = vpop.eup %1140 }
 0x2a9   : > { %v227_v43 = vmul.f32 %v1141_v40, %v1135_v27  ;;  %v319_v47 = vpop.permute.xlu1 %318 }
 0x2ab   : > { %v229_v44 = vpack.c.bf16 %v227_v43, %v226_v42 }
 0x2ad   : > { %1044 = vmatprep.mubr.msk.bf16.mxu1 %vm194_vm2, %v229_v44  ;;  %v321_v49 = vpop.permute.xlu1 %320 }
 0x2ae   : > { %1045 = vmatmul.mubr.msk.bf16.vlgmr.msra.gmra.mrb[0].mxu1 %vm194_vm2, %v230_v46 }
 0x2af   : > { %1049 = vmatpush3.bf16.xpose.msra.mxu1 %v333_v45  ;;  %1052 = vmatprep.mubr.msk.bf16.mxu1 %vm133_vm0, %v319_v47 }
 0x2b0   : > { %1099 = vmatprep.subr.msk.bf16.mxu1 %vm133_vm0, %v325_v39 }
 0x2b7   : > { %1051 = vmatpush3.bf16.xpose.msra.mxu1 %v336_v48 }
 0x2be   : > { %1053 = vmatmul.mubr.msk.bf16.vlgmr.msra.gmra.mrb[4].mxu1 %vm133_vm0, %v321_v49 }
 0x381   : > { %v1046_v50 = vpop.f32.mrb[0].mxu1 }
 0x382   : > { %v990_v52 = vpack.c.bf16 %v1046_v50, %v1046_v50  ;;  %v282_v53 = vpop.f32.mrb[1].mxu1 }
 0x383   : > { %v988_v54 = vpack.c.bf16 %v282_v53, %v282_v53  ;;  %v1047_v55 = vpop.f32.mrb[2].mxu1 }
 0x384   : > { %v316_v56 = vsel %vm314_vm6, %v990_v52, %v315_v51  ;;  %v285_v57 = vpop.f32.mrb[3].mxu1 }
 0x385   : > { %317 = vst [vmem:[%s1269_s18 + $0x8] sm:$0x1] %v316_v56  ;;  %310 = vst.msk [vmem:[%s1269_s18] sm:$0xf] %vm309_vm7, %v988_v54  ;;  %v989_v58 = vpack.c.bf16 %v285_v57, %v285_v57 }
 0x387   : > { %311 = vst.msk [vmem:[%s1269_s18 + $0x4] sm:$0xf] %vm309_vm7, %v989_v58 }
 0x391   : > { %v1054_v59 = vpop.f32.mrb[4].mxu1 }
 0x392   : > { %v372_v60 = vpop.f32.mrb[5].mxu1  ;;  %v392_v3 = vsel %vm201_vm1, %v1054_v59, -inf }
 0x393   : > { %v1055_v61 = vpop.f32.mrb[6].mxu1  ;;  %v386_v62 = vsel %vm194_vm2, %v372_v60, -inf }
 0x394   : > { %387 = vmax.xlane.f32.xlu1 %v386_v62  ;;  %v375_v63 = vpop.f32.mrb[7].mxu1 }
 0x395   : > { %v389_v2 = vsel %vm194_vm2, %v375_v63, -inf }
 0x396   : > { %390 = vmax.xlane.f32.xlu0 %v389_v2 }
 0x398   : > { %393 = vmax.xlane.f32.xlu1 %v392_v3 }
 0x3a9   : > { %421 = vrot.lane.b32.xlu1 %v1227_v0, %s1191_s19 }
 0x421   : > { %v388_v4 = vpop.xlane.xlu1 %387 }
 0x422   : > { %v395_v6 = vsub.f32 %v372_v60, %v388_v4 }
 0x423   : > { %v391_v5 = vpop.xlane.xlu0 %390 }
 0x424   : > { %v396_v7 = vsub.f32 %v375_v63, %v391_v5  ;;  %v398_v11 = vmul.f32 1.442695, %v395_v6 }
 0x425   : > { %v394_v8 = vpop.xlane.xlu1 %393 }
 0x426   : > { %v400_v9 = vmul.f32 1.442695, %v396_v7  ;;  %v397_v10 = vsub.f32 %v1054_v59, %v394_v8 }
 0x428   : > { %1142 = vpow2.f32 %v400_v9  ;;  %v402_v12 = vmul.f32 1.442695, %v397_v10 }
 0x429   : > { %v422_v13 = vpop.permute.xlu1 %421 }
 0x42a   : > { %1144 = vpow2.f32 %v402_v12  ;;  %1056 = vmatprep.subr.bf16.mxu0 %v422_v13 }
 0x42b   : > { %1057 = vmatpush3.bf16.msra.mxu0 %v422_v13  ;;  %1146 = vpow2.f32 %v398_v11 }
 0x432   : > { %v1143_v14 = vpop.eup %1142 }
 0x433   : > { %v407_v15 = vsel %vm194_vm2, %v1143_v14, 0.0 }
 0x434   : > { %v1145_v16 = vpop.eup %1144  ;;  %408 = vadd.xlane.f32.xlu1 %v407_v15 }
 0x435   : > { %v410_v17 = vsel %vm201_vm1, %v1145_v16, 0.0  ;;  %v1147_v18 = vpop.eup %1146 }
 0x436   : > { %411 = vadd.xlane.f32.xlu0 %v410_v17  ;;  %v404_v19 = vsel %vm194_vm2, %v1147_v18, 0.0 }
 0x43a   : > { %405 = vadd.xlane.f32.xlu0 %v404_v19 }
 0x445   : > { %514 = vrot.lane.b32.xlu1 %v1227_v0, %s1192_s20 }
 0x449   : > { %516 = vrot.lane.b32.xlu1 %v1230_v1, %s1192_s20 }
 0x44d   : > { %512 = vrot.lane.b32.xlu1 %v1230_v1, %s1193_s21 }
 0x450   : > { %423 = vrot.lane.b32.xlu0 %v1230_v1, %s1191_s19 }
 0x454   : > { %510 = vrot.lane.b32.xlu0 %v1227_v0, %s1193_s21 }
 0x4c1   : > { %v409_v20 = vpop.xlane.xlu1 %408 }
 0x4c3   : > { %v412_v21 = vpop.xlane.xlu0 %411 }
 0x4c4   : > { %1148 = vrcp.f32 %v412_v21 }
 0x4c5   : > { %1150 = vrcp.f32 %v409_v20  ;;  %v515_v25 = vpop.permute.xlu1 %514 }
 0x4c6   : > { %v525_v34 = vsel %vm133_vm0, %v515_v25, 0 }
 0x4c7   : > { %v406_v22 = vpop.xlane.xlu0 %405 }
 0x4c8   : > { %1152 = vrcp.f32 %v406_v22 }
 0x4c9   : > { %v517_v37 = vpop.permute.xlu1 %516 }
 0x4ca   : > { %v528_v38 = vsel %vm133_vm0, %v517_v37, 0 }
 0x4cb   : > { %v424_v23 = vpop.permute.xlu0 %423 }
 0x4cc   : > { %v433_v24 = vand.u32 %v424_v23, %v1253_v33 }
 0x4cd   : > { %v513_v39 = vpop.permute.xlu1 %512 }
 0x4ce   : > { %1058 = vmatprep.subr.bf16.mxu0 %v433_v24  ;;  %v1149_v26 = vpop.eup %1148 }
 0x4cf   : > { %1059 = vmatpush3.bf16.msra.mxu0 %v433_v24  ;;  %v1151_v27 = vpop.eup %1150  ;;  %v418_v29 = vmul.f32 %v1149_v26, %v1145_v16  ;;  %v511_v36 = vpop.permute.xlu0 %510 }
 0x4d0   : > { %1100 = vmatprep.subr.msk.bf16.mxu0 %vm133_vm0, %v515_v25  ;;  %v417_v31 = vmul.f32 %v1151_v27, %v1143_v14 }
 0x4d1   : > { %v420_v35 = vpack.c.bf16 %v418_v29, %v418_v29 }
 0x4d2   : > { %v1153_v28 = vpop.eup %1152 }
 0x4d3   : > { %v416_v30 = vmul.f32 %v1153_v28, %v1147_v18 }
 0x4d5   : > { %v419_v32 = vpack.c.bf16 %v417_v31, %v416_v30 }
 0x4d7   : > { %1060 = vmatprep.mubr.msk.bf16.mxu0 %vm194_vm2, %v419_v32 }
 0x4d8   : > { %1061 = vmatmul.mubr.msk.bf16.vlgmr.msra.gmra.mrb[4].mxu0 %vm194_vm2, %v420_v35 }
 0x4d9   : > { %1065 = vmatpush3.bf16.xpose.msra.mxu0 %v525_v34  ;;  %1068 = vmatprep.mubr.msk.bf16.mxu0 %vm133_vm0, %v511_v36 }
 0x4da   : > { %1101 = vmatprep.subr.msk.bf16.mxu0 %vm133_vm0, %v517_v37 }
 0x4e1   : > { %1067 = vmatpush3.bf16.xpose.msra.mxu0 %v528_v38 }
 0x4e8   : > { %1069 = vmatmul.mubr.msk.bf16.vlgmr.msra.gmra.mrb[8].mxu0 %vm133_vm0, %v513_v39 }
 0x5ab   : > { %v1299_v40 = vpop.f32.mrb[4].mxu0 }
 0x5ac   : > { %v1301_v41 = vpop.f32.mrb[5].mxu0 }
 0x5ad   : > { %v1063_v42 = vpop.f32.mrb[6].mxu0 }
 0x5ae   : > { %v1303_v43 = vpop.f32.mrb[7].mxu0 }
 0x5bb   : > { %v1070_v44 = vpop.f32.mrb[8].mxu0 }
 0x5bc   : > { %v564_v45 = vpop.f32.mrb[9].mxu0  ;;  %v584_v50 = vsel %vm201_vm1, %v1070_v44, -inf }
 0x5bd   : > { %v1071_v46 = vpop.f32.mrb[10].mxu0  ;;  %v578_v47 = vsel %vm194_vm2, %v564_v45, -inf }
 0x5be   : > { %579 = vmax.xlane.f32.xlu0 %v578_v47  ;;  %v567_v48 = vpop.f32.mrb[11].mxu0 }
 0x5bf   : > { %v581_v49 = vsel %vm194_vm2, %v567_v48, -inf }
 0x5c0   : > { %582 = vmax.xlane.f32.xlu1 %v581_v49 }
 0x5c2   : > { %585 = vmax.xlane.f32.xlu0 %v584_v50 }
 0x5d1   : > { %613 = vrot.lane.b32.xlu1 %v1227_v0, %s1194_s22 }
 0x64b   : > { %v580_v51 = vpop.xlane.xlu0 %579 }
 0x64c   : > { %v587_v53 = vsub.f32 %v564_v45, %v580_v51 }
 0x64d   : > { %v583_v52 = vpop.xlane.xlu1 %582 }
 0x64e   : > { %v588_v54 = vsub.f32 %v567_v48, %v583_v52  ;;  %v590_v59 = vmul.f32 1.442695, %v587_v53 }
 0x64f   : > { %v586_v55 = vpop.xlane.xlu0 %585 }
 0x650   : > { %v592_v56 = vmul.f32 1.442695, %v588_v54  ;;  %v589_v57 = vsub.f32 %v1070_v44, %v586_v55  ;;  %v993_v54 = vpack.c.bf16 %v1299_v40, %v1299_v40 }
 0x651   : > { %v614_v58 = vpop.permute.xlu1 %613 }
 0x652   : > { %1154 = vpow2.f32 %v592_v56  ;;  %v594_v60 = vmul.f32 1.442695, %v589_v57  ;;  %1072 = vmatprep.subr.bf16.mxu1 %v614_v58  ;;  %v992_v56 = vpack.c.bf16 %v1303_v43, %v1303_v43  ;;  %v991_v57 = vpack.c.bf16 %v1301_v41, %v1301_v41 }
 0x653   : > { %1073 = vmatpush3.bf16.msra.mxu1 %v614_v58 }
 0x654   : > { %1156 = vpow2.f32 %v594_v60 }
 0x655   : > { %1158 = vpow2.f32 %v590_v59 }
 0x65c   : > { %v1155_v61 = vpop.eup %1154 }
 0x65d   : > { %v599_v62 = vsel %vm194_vm2, %v1155_v61, 0.0 }
 0x65e   : > { %v1157_v63 = vpop.eup %1156  ;;  %600 = vadd.xlane.f32.xlu1 %v599_v62 }
 0x65f   : > { %v602_v2 = vsel %vm201_vm1, %v1157_v63, 0.0  ;;  %v1159_v3 = vpop.eup %1158 }
 0x660   : > { %603 = vadd.xlane.f32.xlu0 %v602_v2  ;;  %v596_v4 = vsel %vm194_vm2, %v1159_v3, 0.0 }
 0x664   : > { %597 = vadd.xlane.f32.xlu0 %v596_v4 }
 0x66f   : > { %706 = vrot.lane.b32.xlu1 %v1227_v0, %s1195_s23 }
 0x673   : > { %708 = vrot.lane.b32.xlu1 %v1230_v1, %s1195_s23 }
 0x677   : > { %704 = vrot.lane.b32.xlu1 %v1230_v1, %s1196_s24 }
 0x67a   : > { %615 = vrot.lane.b32.xlu0 %v1230_v1, %s1194_s22 }
 0x67e   : > { %702 = vrot.lane.b32.xlu0 %v1227_v0, %s1196_s24 }
 0x6eb   : > { %v601_v5 = vpop.xlane.xlu1 %600 }
 0x6ed   : > { %v604_v6 = vpop.xlane.xlu0 %603 }
 0x6ee   : > { %1160 = vrcp.f32 %v604_v6 }
 0x6ef   : > { %1162 = vrcp.f32 %v601_v5  ;;  %v707_v10 = vpop.permute.xlu1 %706 }
 0x6f0   : > { %v717_v18 = vsel %vm133_vm0, %v707_v10, 0 }
 0x6f1   : > { %v598_v7 = vpop.xlane.xlu0 %597 }
 0x6f2   : > { %1164 = vrcp.f32 %v598_v7 }
 0x6f3   : > { %v709_v21 = vpop.permute.xlu1 %708 }
 0x6f4   : > { %v720_v22 = vsel %vm133_vm0, %v709_v21, 0 }
 0x6f5   : > { %v616_v8 = vpop.permute.xlu0 %615 }
 0x6f6   : > { %v625_v9 = vand.u32 %v616_v8, %v1253_v33 }
 0x6f7   : > { %v705_v23 = vpop.permute.xlu1 %704 }
 0x6f8   : > { %1074 = vmatprep.subr.bf16.mxu1 %v625_v9  ;;  %v1161_v11 = vpop.eup %1160 }
 0x6f9   : > { %1075 = vmatpush3.bf16.msra.mxu1 %v625_v9  ;;  %v1163_v12 = vpop.eup %1162  ;;  %v610_v14 = vmul.f32 %v1161_v11, %v1157_v63  ;;  %v703_v20 = vpop.permute.xlu0 %702 }
 0x6fa   : > { %1102 = vmatprep.subr.msk.bf16.mxu1 %vm133_vm0, %v707_v10  ;;  %v609_v16 = vmul.f32 %v1163_v12, %v1155_v61 }
 0x6fb   : > { %v612_v19 = vpack.c.bf16 %v610_v14, %v610_v14 }
 0x6fc   : > { %v1165_v13 = vpop.eup %1164 }
 0x6fd   : > { %v608_v15 = vmul.f32 %v1165_v13, %v1159_v3 }
 0x6ff   : > { %v611_v17 = vpack.c.bf16 %v609_v16, %v608_v15 }
 0x701   : > { %1076 = vmatprep.mubr.msk.bf16.mxu1 %vm194_vm2, %v611_v17 }
 0x702   : > { %1077 = vmatmul.mubr.msk.bf16.vlgmr.msra.gmra.mrb[8].mxu1 %vm194_vm2, %v612_v19 }
 0x703   : > { %1081 = vmatpush3.bf16.xpose.msra.mxu1 %v717_v18  ;;  %1084 = vmatprep.mubr.msk.bf16.mxu1 %vm133_vm0, %v703_v20 }
 0x704   : > { %1103 = vmatprep.subr.msk.bf16.mxu1 %vm133_vm0, %v709_v21 }
 0x70b   : > { %1083 = vmatpush3.bf16.xpose.msra.mxu1 %v720_v22 }
 0x712   : > { %1085 = vmatmul.mubr.msk.bf16.vlgmr.msra.gmra.mrb[12].mxu1 %vm133_vm0, %v705_v23  ;;  %vm886_vm0 = vcmask 257216  }
 0x7d5   : > { %v1078_v24 = vpop.f32.mrb[8].mxu1 }
 0x7d6   : > { %v661_v25 = vpop.f32.mrb[9].mxu1  ;;  %v996_v55 = vpack.c.bf16 %v1078_v24, %v1078_v24 }
 0x7d7   : > { %v1079_v26 = vpop.f32.mrb[10].mxu1 }
 0x7d8   : > { %v664_v27 = vpop.f32.mrb[11].mxu1 }
 0x7d9   : > { %v995_v58 = vpack.c.bf16 %v664_v27, %v664_v27 }
 0x7e5   : > { %v1086_v28 = vpop.f32.mrb[12].mxu1 }
 0x7e6   : > { %v756_v29 = vpop.f32.mrb[13].mxu1  ;;  %v776_v35 = vsel %vm201_vm1, %v1086_v28, -inf }
 0x7e7   : > { %v1087_v30 = vpop.f32.mrb[14].mxu1  ;;  %v770_v31 = vsel %vm194_vm2, %v756_v29, -inf }
 0x7e8   : > { %771 = vmax.xlane.f32.xlu0 %v770_v31  ;;  %v759_v32 = vpop.f32.mrb[15].mxu1 }
 0x7e9   : > { %v773_v34 = vsel %vm194_vm2, %v759_v32, -inf }
 0x7ea   : > { %774 = vmax.xlane.f32.xlu1 %v773_v34 }
 0x7ec   : > { %777 = vmax.xlane.f32.xlu0 %v776_v35 }
 0x875   : > { %v772_v36 = vpop.xlane.xlu0 %771 }
 0x876   : > { %v779_v38 = vsub.f32 %v756_v29, %v772_v36 }
 0x877   : > { %v775_v37 = vpop.xlane.xlu1 %774 }
 0x878   : > { %v780_v39 = vsub.f32 %v759_v32, %v775_v37  ;;  %v782_v46 = vmul.f32 1.442695, %v779_v38 }
 0x879   : > { %v778_v42 = vpop.xlane.xlu0 %777 }
 0x87a   : > { %v784_v44 = vmul.f32 1.442695, %v780_v39  ;;  %v781_v45 = vsub.f32 %v1086_v28, %v778_v42 }
 0x87c   : > { %1166 = vpow2.f32 %v784_v44  ;;  %v786_v47 = vmul.f32 1.442695, %v781_v45 }
 0x87e   : > { %1168 = vpow2.f32 %v786_v47 }
 0x87f   : > { %1170 = vpow2.f32 %v782_v46 }
 0x886   : > { %v1167_v48 = vpop.eup %1166 }
 0x887   : > { %v791_v49 = vsel %vm194_vm2, %v1167_v48, 0.0 }
 0x888   : > { %v1169_v50 = vpop.eup %1168  ;;  %792 = vadd.xlane.f32.xlu1 %v791_v49 }
 0x889   : > { %v794_v51 = vsel %vm201_vm1, %v1169_v50, 0.0  ;;  %v1171_v52 = vpop.eup %1170 }
 0x88a   : > { %795 = vadd.xlane.f32.xlu0 %v794_v51  ;;  %v788_v53 = vsel %vm194_vm2, %v1171_v52, 0.0 }
 0x88e   : > { %789 = vadd.xlane.f32.xlu0 %v788_v53 }
 0x899   : > { %805 = vrot.lane.b32.xlu1 %v1227_v0, %s1197_s25  ;;  %v994_v0 = vpack.c.bf16 %v661_v25, %v661_v25 }
 0x89d   : > { %497 = vrot.lane.b32.xlu1 %v993_v54, %s1198_s26 }
 0x8a1   : > { %689 = vrot.lane.b32.xlu1 %v996_v55, %s1199_s27 }
 0x8a4   : > { %807 = vrot.lane.b32.xlu0 %v1230_v1, %s1197_s25  ;;  %v507_v1 = vld [vmem:[%s1269_s18 + $0x8] sm:$0x1] }
 0x8a5   : > { %495 = vrot.lane.b32.xlu1 %v992_v56, %s1198_s26 }
 0x8a8   : > { %493 = vrot.lane.b32.xlu0 %v991_v57, %s1198_s26 }
 0x8a9   : > { %687 = vrot.lane.b32.xlu1 %v995_v58, %s1199_s27 }
 0x8ac   : > { %685 = vrot.lane.b32.xlu0 %v994_v0, %s1199_s27 }
 0x915   : > { %v793_v40 = vpop.xlane.xlu1 %792 }
 0x917   : > { %v796_v59 = vpop.xlane.xlu0 %795 }
 0x918   : > { %1172 = vrcp.f32 %v796_v59 }
 0x919   : > { %v806_v60 = vpop.permute.xlu1 %805  ;;  %1174 = vrcp.f32 %v793_v40 }
 0x91a   : > { %1088 = vmatprep.subr.bf16.mxu0 %v806_v60 }
 0x91b   : > { %v790_v43 = vpop.xlane.xlu0 %789  ;;  %1089 = vmatpush3.bf16.msra.mxu0 %v806_v60 }
 0x91c   : > { %1176 = vrcp.f32 %v790_v43 }
 0x91d   : > { %v498_v41 = vpop.permute.xlu1 %497 }
 0x91e   : > { %v508_v61 = vsel %vm506_vm9, %v498_v41, %v507_v1 }
 0x91f   : > { %509 = vst [vmem:[%s1269_s18 + $0x8] sm:$0x1] %v508_v61  ;;  %v808_v62 = vpop.permute.xlu0 %807 }
 0x920   : > { %v817_v63 = vand.u32 %v808_v62, %v1253_v33 }
 0x921   : > { %v690_v2 = vpop.permute.xlu1 %689 }
 0x922   : > { %1090 = vmatprep.subr.bf16.mxu0 %v817_v63  ;;  %v1173_v3 = vpop.eup %1172 }
 0x923   : > { %v494_v4 = vpop.permute.xlu0 %493  ;;  %1091 = vmatpush3.bf16.msra.mxu0 %v817_v63  ;;  %v1175_v5 = vpop.eup %1174  ;;  %v802_v8 = vmul.f32 %v1173_v3, %v1169_v50 }
 0x924   : > { %503 = vst.msk [vmem:[%s1269_s18] sm:$0xf] %vm502_vm11, %v494_v4  ;;  %v801_v12 = vmul.f32 %v1175_v5, %v1167_v48 }
 0x925   : > { %v496_v6 = vpop.permute.xlu1 %495  ;;  %v804_v15 = vpack.c.bf16 %v802_v8, %v802_v8 }
 0x926   : > { %v1177_v7 = vpop.eup %1176  ;;  %v699_v33 = vld [vmem:[%s1269_s18 + $0x8] sm:$0x1]  ;;  %504 = vst.msk [vmem:[%s1269_s18 + $0x4] sm:$0xf] %vm502_vm11, %v496_v6 }
 0x927   : > { %v700_v9 = vsel %vm698_vm12, %v690_v2, %v699_v33  ;;  %v686_v10 = vpop.permute.xlu0 %685  ;;  %v800_v11 = vmul.f32 %v1177_v7, %v1171_v52 }
 0x928   : > { %701 = vst [vmem:[%s1269_s18 + $0x8] sm:$0x1] %v700_v9  ;;  %695 = vst.msk [vmem:[%s1269_s18] sm:$0xf] %vm694_vm13, %v686_v10 }
 0x929   : > { %v688_v13 = vpop.permute.xlu1 %687  ;;  %v803_v14 = vpack.c.bf16 %v801_v12, %v800_v11 }
 0x92a   : > { %696 = vst.msk [vmem:[%s1269_s18 + $0x4] sm:$0xf] %vm694_vm13, %v688_v13 }
 0x92b   : > { %1092 = vmatprep.mubr.msk.bf16.mxu0 %vm194_vm2, %v803_v14 }
 0x92c   : > { %1093 = vmatmul.mubr.msk.bf16.vlgmr.msra.gmra.mrb[12].mxu0 %vm194_vm2, %v804_v15 }
 0x92f   : > { %v891_v24 = vld [vmem:[%s1269_s18 + $0x8] sm:$0x1] }
 0x9ff   : > { %v1094_v16 = vpop.f32.mrb[12].mxu0 }
 0xa00   : > { %v999_v17 = vpack.c.bf16 %v1094_v16, %v1094_v16  ;;  %v853_v18 = vpop.f32.mrb[13].mxu0 }
 0xa01   : > { %v997_v19 = vpack.c.bf16 %v853_v18, %v853_v18  ;;  %v1095_v20 = vpop.f32.mrb[14].mxu0 }
 0xa02   : > { %881 = vrot.lane.b32.xlu0 %v999_v17, %s1200_s28  ;;  %v856_v21 = vpop.f32.mrb[15].mxu0 }
 0xa03   : > { %v998_v22 = vpack.c.bf16 %v856_v21, %v856_v21  ;;  %877 = vrot.lane.b32.xlu1 %v997_v19, %s1200_s28 }
 0xa06   : > { %879 = vrot.lane.b32.xlu0 %v998_v22, %s1200_s28 }
 0xa74   : > { %v882_v23 = vpop.permute.xlu0 %881 }
 0xa75   : > { %v892_v25 = vsel %vm890_vm15, %v882_v23, %v891_v24  ;;  %v878_v26 = vpop.permute.xlu1 %877 }
 0xa76   : > { %893 = vst [vmem:[%s1269_s18 + $0x8] sm:$0x1] %v892_v25  ;;  %887 = vst.msk [vmem:[%s1269_s18] sm:$0xf] %vm886_vm0, %v878_v26 }
 0xa78   : > { %v880_v27 = vpop.permute.xlu0 %879 }
 0xa79   : > { %888 = vst.msk [vmem:[%s1269_s18 + $0x4] sm:$0xf] %vm886_vm0, %v880_v27 }
 0xa7a PF: > { %s11_s6 = sadd.s32 1, %s1184_s6  }
 0xa7b   : > { %p8_p4 = scmp.ge.s32.totalorder %s11_s6, 4  }
 0xa7d   :  { %10 = sbr.rel (!%p8_p4) target bundleno = 1 (0x1), region = 54 }

// kernel: vision_transformer.18
= control target key start
LH: loop header
LB: loop body
LE: loop exit
PB: predicated region body
PF: predicated region fallthrough
CT: control target
= control target key end

     0   :  { %vm35_vm0 = vcmask 261120   ;;  %vm48_vm1 = vcmask 254976   ;;  %v450_v39 = vmov 0.0   ;;  %vm451_vm2 = vmmov 0   ;;  %s567_s0 = inlined_call_operand.vmem [shape: bf16[34,32], index: 0, kind: input, shape index: {}]   ;;  %s568_s1 = inlined_call_operand.vmem [shape: bf16[32,128], index: 1, kind: input, shape index: {}]   ;;  %s569_s3 = inlined_call_operand.vmem [shape: f32[1,32], index: 3, kind: input, shape index: {}]   ;;  %s570_s4 = inlined_call_operand.vmem [shape: f32[1,32], index: 4, kind: input, shape index: {}]   ;;  %s571_s2 = inlined_call_operand.vmem [shape: f32[1,128], index: 2, kind: input, shape index: {}]   ;;  %s572_s5 = inlined_call_operand.vmem [shape: bf16[34,128], index: 5, kind: output, shape index: {}]  }
   0x1   :  { %v386_v0 = vld [vmem:[%s567_s0 + $0x8] sm:$0xff]   ;;  %v369_v1 = vld [vmem:[%s567_s0] sm:$0xff]   ;;  %v29_v5 = vld [vmem:[%s567_s0 + $0x10] sm:$0x1]  ;;  %409 = vmatprep.subr.bf16.mxu1 %v450_v39  ;;  %393 = vmatprep.subr.bf16.mxu0 %v450_v39  ;;  %vm148_vm3 = vcmask 257024   ;;  %vm153_vm4 = vcmask 253952  }
   0x2   :  { %v374_v2 = vunpack.c.l.bf16 %v386_v0  ;;  %v375_v3 = vunpack.c.h.bf16 %v386_v0  ;;  %v370_v4 = vunpack.c.l.bf16 %v369_v1  ;;  %v371_v6 = vunpack.c.h.bf16 %v369_v1  ;;  %v415_v38 = vld [vmem:[%s568_s1] sm:$0xff]   ;;  %v416_v40 = vld [vmem:[%s568_s1 + $0x8] sm:$0xff]   ;;  %401 = vmatprep.mubr.msk.bf16.mxu1 %vm451_vm2, %v450_v39  ;;  %397 = vmatprep.mubr.msk.bf16.mxu0 %vm451_vm2, %v450_v39 }
   0x3   :  { %v34_v10 = vunpack.c.l.bf16 %v29_v5  ;;  %411 = vmatpush3.bf16.msra.mxu1 %v415_v38  ;;  %394 = vmatpush3.bf16.msra.mxu0 %v415_v38  ;;  %v332_v57 = vld [vmem:[%s569_s3] ss:$0 sm:$0xff] }
   0x4   :  { %v42_v7 = vsel %vm35_vm0, %v374_v2, 0.0  ;;  %v36_v8 = vsel %vm35_vm0, %v370_v4, 0.0  ;;  %v45_v9 = vsel %vm35_vm0, %v375_v3, 0.0  ;;  %v39_v11 = vsel %vm35_vm0, %v371_v6, 0.0  ;;  %410 = vmatprep.subr.bf16.mxu1 %v450_v39  ;;  %395 = vmatprep.subr.bf16.mxu0 %v450_v39  ;;  %v333_v59 = vld [vmem:[%s570_s4] ss:$0 sm:$0xff] }
   0x5   :  { %43 = vadd.xlane.f32.xlu0 %v42_v7  ;;  %37 = vadd.xlane.f32.xlu1 %v36_v8  ;;  %v49_v12 = vsel %vm48_vm1, %v34_v10, 0.0 }
   0x7   :  { %412 = vmatpush3.bf16.msra.mxu1 %v416_v40  ;;  %396 = vmatpush3.bf16.msra.mxu0 %v416_v40 }
   0x9   :  { %46 = vadd.xlane.f32.xlu0 %v45_v9  ;;  %40 = vadd.xlane.f32.xlu1 %v39_v11 }
   0xd   :  { %50 = vadd.xlane.f32.xlu0 %v49_v12 }
  0x92   :  { %v44_v13 = vpop.xlane.xlu0 %43  ;;  %v38_v14 = vpop.xlane.xlu1 %37 }
  0x93   :  { %v55_v15 = vmul.f32 0.03125, %v44_v13  ;;  %v53_v16 = vmul.f32 0.03125, %v38_v14 }
  0x95   :  { %v496_v17 = vsub.f32 %v374_v2, %v55_v15  ;;  %v498_v18 = vsub.f32 %v370_v4, %v53_v16 }
  0x96   :  { %v47_v19 = vpop.xlane.xlu0 %46  ;;  %v41_v20 = vpop.xlane.xlu1 %40 }
  0x97   :  { %v56_v21 = vmul.f32 0.03125, %v47_v19  ;;  %v65_v22 = vmul.f32 %v496_v17, %v496_v17  ;;  %v54_v23 = vmul.f32 0.03125, %v41_v20  ;;  %v63_v24 = vmul.f32 %v498_v18, %v498_v18 }
  0x99   :  { %v504_v25 = vsub.f32 %v375_v3, %v56_v21  ;;  %v74_v26 = vsel %vm35_vm0, %v65_v22, 0.0  ;;  %v507_v27 = vsub.f32 %v371_v6, %v54_v23  ;;  %v68_v31 = vsel %vm35_vm0, %v63_v24, 0.0  ;;  %v339_v22 = vld [vmem:[%s571_s2] ss:$0 sm:$0xff] }
  0x9a   :  { %v51_v28 = vpop.xlane.xlu0 %50  ;;  %75 = vadd.xlane.f32.xlu1 %v74_v26 }
  0x9b   :  { %v57_v29 = vmul.f32 0.03125, %v51_v28  ;;  %v66_v30 = vmul.f32 %v504_v25, %v504_v25  ;;  %v64_v32 = vmul.f32 %v507_v27, %v507_v27 }
  0x9d   :  { %v514_v33 = vsub.f32 %v34_v10, %v57_v29  ;;  %v77_v34 = vsel %vm35_vm0, %v66_v30, 0.0  ;;  %v71_v36 = vsel %vm35_vm0, %v64_v32, 0.0 }
  0x9e   :  { %78 = vadd.xlane.f32.xlu0 %v77_v34  ;;  %69 = vadd.xlane.f32.xlu1 %v68_v31 }
  0x9f   :  { %v67_v35 = vmul.f32 %v514_v33, %v514_v33 }
  0xa1   :  { %v80_v37 = vsel %vm48_vm1, %v67_v35, 0.0 }
  0xa2   :  { %81 = vadd.xlane.f32.xlu1 %v80_v37  ;;  %72 = vadd.xlane.f32.xlu0 %v71_v36 }
 0x127   :  { %v76_v41 = vpop.xlane.xlu1 %75 }
 0x128   :  { %v85_v42 = vmul.f32 0.03125, %v76_v41 }
 0x12a   :  { %v90_v43 = vadd.f32 1e-05, %v85_v42 }
 0x12b   :  { %v79_v44 = vpop.xlane.xlu0 %78  ;;  %v70_v45 = vpop.xlane.xlu1 %69 }
 0x12c   :  { %420 = vrsqrt.f32 %v90_v43  ;;  %v86_v46 = vmul.f32 0.03125, %v79_v44  ;;  %v83_v47 = vmul.f32 0.03125, %v70_v45 }
 0x12e   :  { %v91_v48 = vadd.f32 1e-05, %v86_v46  ;;  %v88_v49 = vadd.f32 1e-05, %v83_v47 }
 0x12f   :  { %v73_v50 = vpop.xlane.xlu0 %72  ;;  %v82_v51 = vpop.xlane.xlu1 %81 }
 0x130   :  { %422 = vrsqrt.f32 %v91_v48  ;;  %v84_v52 = vmul.f32 0.03125, %v73_v50  ;;  %v87_v53 = vmul.f32 0.03125, %v82_v51 }
 0x131   :  { %424 = vrsqrt.f32 %v88_v49 }
 0x132   :  { %v89_v54 = vadd.f32 1e-05, %v84_v52  ;;  %v92_v55 = vadd.f32 1e-05, %v87_v53 }
 0x134   :  { %426 = vrsqrt.f32 %v89_v54 }
 0x135   :  { %428 = vrsqrt.f32 %v92_v55 }
 0x136   :  { %v421_v56 = vpop.eup %420 }
 0x137   :  { %v100_v58 = vmul.f32 %v421_v56, %v496_v17 }
 0x139   :  { %v112_v60 = vmul.f32 %v332_v57, %v100_v58 }
 0x13a   :  { %v423_v61 = vpop.eup %422 }
 0x13b   :  { %v425_v62 = vpop.eup %424  ;;  %v124_v63 = vadd.f32 %v333_v59, %v112_v60  ;;  %v101_v0 = vmul.f32 %v423_v61, %v504_v25 }
 0x13c   :  { %v98_v1 = vmul.f32 %v425_v62, %v498_v18 }
 0x13d   :  { %v360_v2 = vpack.c.bf16 %v124_v63, %v124_v63  ;;  %v113_v3 = vmul.f32 %v332_v57, %v101_v0 }
 0x13e   :  { %v427_v4 = vpop.eup %426  ;;  %v110_v5 = vmul.f32 %v332_v57, %v98_v1 }
 0x13f   :  { %v429_v6 = vpop.eup %428  ;;  %151 = vst.msk [vmem:[#allocation2 + $0x8] sm:$0xf] %vm148_vm3, %v360_v2  ;;  %v125_v7 = vadd.f32 %v333_v59, %v113_v3  ;;  %v99_v8 = vmul.f32 %v427_v4, %v507_v27 }
 0x140   :  { %v122_v9 = vadd.f32 %v333_v59, %v110_v5  ;;  %v102_v10 = vmul.f32 %v429_v6, %v514_v33 }
 0x141   :  { %v361_v11 = vpack.c.bf16 %v125_v7, %v125_v7  ;;  %v111_v12 = vmul.f32 %v332_v57, %v99_v8 }
 0x142   :  { %v358_v13 = vpack.c.bf16 %v122_v9, %v122_v9  ;;  %v114_v14 = vmul.f32 %v332_v57, %v102_v10 }
 0x143   :  { %152 = vst.msk [vmem:[#allocation2 + $0xc] sm:$0xf] %vm148_vm3, %v361_v11  ;;  %v123_v15 = vadd.f32 %v333_v59, %v111_v12 }
 0x144   :  { %149 = vst.msk [vmem:[#allocation2] sm:$0xf] %vm148_vm3, %v358_v13  ;;  %v126_v16 = vadd.f32 %v333_v59, %v114_v14 }
 0x145   :  { %v359_v17 = vpack.c.bf16 %v123_v15, %v123_v15 }
 0x146   :  { %v362_v18 = vpack.c.bf16 %v126_v16, %v126_v16 }
 0x147   :  { %150 = vst.msk [vmem:[#allocation2 + $0x4] sm:$0xf] %vm148_vm3, %v359_v17 }
 0x148   :  { %154 = vst.msk [vmem:[#allocation2 + $0x10] sm:$0x1] %vm153_vm4, %v362_v18 }
 0x14a   :  { %v417_v19 = vld [vmem:[#allocation2 + $0x8] sm:$0xff]  }
 0x14b   :  { %402 = vmatmul.mubr.msk.bf16.vlgmr.msra.gmra.mrb[0].mxu1 %vm35_vm0, %v417_v19 }
 0x14c   :  { %405 = vmatprep.mubr.msk.bf16.mxu1 %vm451_vm2, %v450_v39 }
 0x14e   :  { %v418_v20 = vld [vmem:[#allocation2] sm:$0xff]  }
 0x14f   :  { %398 = vmatmul.mubr.msk.bf16.vlgmr.msra.gmra.mrb[0].mxu0 %vm35_vm0, %v418_v20  ;;  %v419_v21 = vld [vmem:[#allocation2 + $0x10] ss:$0 sps:$4 sm:$0x11]  }
 0x153   :  { %406 = vmatmul.mubr.msk.bf16.gmra.mrb[4].mxu1 %vm35_vm0, %v419_v21 }
 0x21e   :  { %v248_v23 = vpop.f32.mrb[0].mxu1 }
 0x21f   :  { %v249_v24 = vadd.f32 %v339_v22, %v248_v23  ;;  %v403_v25 = vpop.f32.mrb[1].mxu1 }
 0x220   :  { %v251_v26 = vpop.f32.mrb[2].mxu1 }
 0x221   :  { %v350_v27 = vmul.f32 -1.702, %v249_v24  ;;  %v252_v28 = vadd.f32 %v339_v22, %v251_v26  ;;  %v404_v29 = vpop.f32.mrb[3].mxu1 }
 0x222   :  { %v240_v30 = vpop.f32.mrb[0].mxu0 }
 0x223   :  { %v276_v31 = vmul.f32 1.442695, %v350_v27  ;;  %v351_v32 = vmul.f32 -1.702, %v252_v28  ;;  %v241_v33 = vadd.f32 %v339_v22, %v240_v30  ;;  %v399_v34 = vpop.f32.mrb[1].mxu0 }
 0x224   :  { %v243_v35 = vpop.f32.mrb[2].mxu0 }
 0x225   :  { %430 = vpow2.f32 %v276_v31  ;;  %v278_v36 = vmul.f32 1.442695, %v351_v32  ;;  %v348_v37 = vmul.f32 -1.702, %v241_v33  ;;  %v244_v38 = vadd.f32 %v339_v22, %v243_v35  ;;  %v400_v39 = vpop.f32.mrb[3].mxu0 }
 0x226   :  { %v256_v40 = vpop.f32.mrb[4].mxu1 }
 0x227   :  { %432 = vpow2.f32 %v278_v36  ;;  %v272_v41 = vmul.f32 1.442695, %v348_v37  ;;  %v349_v42 = vmul.f32 -1.702, %v244_v38  ;;  %v257_v43 = vadd.f32 %v339_v22, %v256_v40  ;;  %v407_v44 = vpop.f32.mrb[5].mxu1 }
 0x228   :  { %v259_v45 = vpop.f32.mrb[6].mxu1 }
 0x229   :  { %434 = vpow2.f32 %v272_v41  ;;  %v274_v46 = vmul.f32 1.442695, %v349_v42  ;;  %v352_v47 = vmul.f32 -1.702, %v257_v43  ;;  %v408_v48 = vpop.f32.mrb[7].mxu1 }
 0x22b   :  { %436 = vpow2.f32 %v274_v46  ;;  %v280_v49 = vmul.f32 1.442695, %v352_v47 }
 0x22d   :  { %438 = vpow2.f32 %v280_v49 }
 0x22f   :  { %v431_v50 = vpop.eup %430 }
 0x230   :  { %v284_v51 = vadd.f32 1.0, %v431_v50 }
 0x231   :  { %v433_v52 = vpop.eup %432 }
 0x232   :  { %440 = vrcp.f32 %v284_v51  ;;  %v285_v53 = vadd.f32 1.0, %v433_v52 }
 0x233   :  { %v435_v54 = vpop.eup %434 }
 0x234   :  { %442 = vrcp.f32 %v285_v53  ;;  %v282_v55 = vadd.f32 1.0, %v435_v54 }
 0x235   :  { %v437_v56 = vpop.eup %436 }
 0x236   :  { %444 = vrcp.f32 %v282_v55  ;;  %v283_v57 = vadd.f32 1.0, %v437_v56 }
 0x237   :  { %v439_v58 = vpop.eup %438 }
 0x238   :  { %446 = vrcp.f32 %v283_v57  ;;  %v286_v59 = vadd.f32 1.0, %v439_v58 }
 0x23a   :  { %448 = vrcp.f32 %v286_v59 }
 0x23c   :  { %v441_v60 = vpop.eup %440 }
 0x23d   :  { %v299_v62 = vmul.f32 %v441_v60, %v249_v24 }
 0x23e   :  { %v443_v61 = vpop.eup %442 }
 0x23f   :  { %v300_v63 = vmul.f32 %v443_v61, %v252_v28 }
 0x240   :  { %v445_v0 = vpop.eup %444 }
 0x241   :  { %v384_v1 = vpack.c.bf16 %v300_v63, %v299_v62  ;;  %v297_v3 = vmul.f32 %v445_v0, %v241_v33 }
 0x242   :  { %v447_v2 = vpop.eup %446 }
 0x243   :  { %387 = vst [vmem:[%s572_s5 + $0x8] sm:$0xff] %v384_v1   ;;  %v298_v4 = vmul.f32 %v447_v2, %v244_v38 }
 0x244   :  { %v449_v5 = vpop.eup %448 }
 0x245   :  { %v379_v6 = vpack.c.bf16 %v298_v4, %v297_v3  ;;  %v301_v7 = vmul.f32 %v449_v5, %v257_v43 }
 0x247   :  { %380 = vst [vmem:[%s572_s5] sm:$0xff] %v379_v6   ;;  %v367_v8 = vpack.c.bf16 %v301_v7, %v301_v7 }
 0x249   :  { %327 = vst [vmem:[%s572_s5 + $0x10] sm:$0x1] %v367_v8 }

// kernel: vision_transformer.19
= control target key start
LH: loop header
LB: loop body
LE: loop exit
PB: predicated region body
PF: predicated region fallthrough
CT: control target
= control target key end

     0   :  { %v312_v0 = vmov 0.0   ;;  %vm313_vm0 = vmmov 0   ;;  %vm202_vm1 = vcmask 257024   ;;  %vm207_vm2 = vcmask 253952   ;;  %s402_s1 = inlined_call_operand.vmem [shape: bf16[128,32], index: 1, kind: input, shape index: {}]   ;;  %s403_s0 = inlined_call_operand.vmem [shape: bf16[34,128], index: 0, kind: input, shape index: {}]   ;;  %s404_s3 = inlined_call_operand.vmem [shape: bf16[34,32], index: 3, kind: input, shape index: {}]   ;;  %s405_s2 = inlined_call_operand.vmem [shape: f32[1,32], index: 2, kind: input, shape index: {}]   ;;  %s406_s4 = inlined_call_operand.vmem [shape: bf16[34,32], index: 4, kind: output, shape index: {}]  }
   0x1   :  { %283 = vmatprep.subr.bf16.mxu1 %v312_v0  ;;  %v301_v1 = vld [vmem:[%s402_s1] sm:$0xff]   ;;  %255 = vmatprep.subr.bf16.mxu0 %v312_v0  ;;  %v302_v2 = vld [vmem:[%s402_s1 + $0x8] sm:$0xff]   ;;  %v303_v3 = vld [vmem:[%s402_s1 + $0x10] sm:$0xff]  }
   0x2   :  { %275 = vmatprep.mubr.msk.bf16.mxu1 %vm313_vm0, %v312_v0  ;;  %271 = vmatprep.mubr.msk.bf16.mxu0 %vm313_vm0, %v312_v0  ;;  %v304_v4 = vld [vmem:[%s402_s1 + $0x18] sm:$0xff]   ;;  %v305_v5 = vld [vmem:[%s402_s1 + $0x20] sm:$0xff]   ;;  %v306_v6 = vld [vmem:[%s402_s1 + $0x28] sm:$0xff]  }
   0x3   :  { %291 = vmatpush3.bf16.msra.mxu1 %v301_v1  ;;  %256 = vmatpush3.bf16.msra.mxu0 %v301_v1  ;;  %v307_v7 = vld [vmem:[%s402_s1 + $0x30] sm:$0xff]   ;;  %v308_v8 = vld [vmem:[%s402_s1 + $0x38] sm:$0xff]   ;;  %v309_v9 = vld [vmem:[%s403_s0 + $0x8] sm:$0xff]  }
   0x4   :  { %284 = vmatprep.subr.bf16.mxu1 %v312_v0  ;;  %257 = vmatprep.subr.bf16.mxu0 %v312_v0  ;;  %v310_v10 = vld [vmem:[%s403_s0] sm:$0xff]   ;;  %v311_v11 = vld [vmem:[%s403_s0 + $0x10] ss:$0 sps:$4 sm:$0x11]   ;;  %v243_v12 = vld [vmem:[%s404_s3 + $0x8] sm:$0xff]  }
   0x5   :  { %v236_v13 = vld [vmem:[%s404_s3] sm:$0xff]   ;;  %v241_v15 = vunpack.c.l.bf16 %v243_v12  ;;  %v242_v21 = vunpack.c.h.bf16 %v243_v12  ;;  %v170_v33 = vld [vmem:[%s404_s3 + $0x10] sm:$0x1] }
   0x6   :  { %v213_v14 = vld [vmem:[%s405_s2] ss:$0 sm:$0xff]  ;;  %v237_v16 = vunpack.c.l.bf16 %v236_v13  ;;  %v238_v24 = vunpack.c.h.bf16 %v236_v13  ;;  %v175_v40 = vunpack.c.l.bf16 %v170_v33 }
   0x7   :  { %292 = vmatpush3.bf16.msra.mxu1 %v302_v2  ;;  %258 = vmatpush3.bf16.msra.mxu0 %v302_v2 }
   0x8   :  { %285 = vmatprep.subr.bf16.mxu1 %v312_v0  ;;  %259 = vmatprep.subr.bf16.mxu0 %v312_v0 }
   0xb   :  { %293 = vmatpush3.bf16.msra.mxu1 %v303_v3  ;;  %260 = vmatpush3.bf16.msra.mxu0 %v303_v3 }
   0xc   :  { %286 = vmatprep.subr.bf16.mxu1 %v312_v0  ;;  %261 = vmatprep.subr.bf16.mxu0 %v312_v0 }
   0xf   :  { %294 = vmatpush3.bf16.msra.mxu1 %v304_v4  ;;  %262 = vmatpush3.bf16.msra.mxu0 %v304_v4 }
  0x10   :  { %287 = vmatprep.subr.bf16.mxu1 %v312_v0  ;;  %263 = vmatprep.subr.bf16.mxu0 %v312_v0 }
  0x13   :  { %295 = vmatpush3.bf16.msra.mxu1 %v305_v5  ;;  %264 = vmatpush3.bf16.msra.mxu0 %v305_v5 }
  0x14   :  { %288 = vmatprep.subr.bf16.mxu1 %v312_v0  ;;  %265 = vmatprep.subr.bf16.mxu0 %v312_v0 }
  0x17   :  { %296 = vmatpush3.bf16.msra.mxu1 %v306_v6  ;;  %266 = vmatpush3.bf16.msra.mxu0 %v306_v6 }
  0x18   :  { %289 = vmatprep.subr.bf16.mxu1 %v312_v0  ;;  %267 = vmatprep.subr.bf16.mxu0 %v312_v0 }
  0x1b   :  { %297 = vmatpush3.bf16.msra.mxu1 %v307_v7  ;;  %268 = vmatpush3.bf16.msra.mxu0 %v307_v7 }
  0x1c   :  { %290 = vmatprep.subr.bf16.mxu1 %v312_v0  ;;  %269 = vmatprep.subr.bf16.mxu0 %v312_v0 }
  0x1f   :  { %298 = vmatpush3.bf16.msra.mxu1 %v308_v8  ;;  %270 = vmatpush3.bf16.msra.mxu0 %v308_v8 }
  0x22   :  { %276 = vmatmul.mubr.bf16.vlgmr.msra.gmra.mrb[0].mxu1 %v309_v9  ;;  %272 = vmatmul.mubr.bf16.vlgmr.msra.gmra.mrb[0].mxu0 %v310_v10 }
  0x23   :  { %279 = vmatprep.mubr.msk.bf16.mxu1 %vm313_vm0, %v312_v0 }
  0x2a   :  { %280 = vmatmul.mubr.bf16.gmra.mrb[4].mxu1 %v311_v11 }
  0xf5   :  { %v152_v17 = vpop.f32.mrb[0].mxu1  ;;  %v144_v18 = vpop.f32.mrb[0].mxu0 }
  0xf6   :  { %v153_v19 = vadd.f32 %v213_v14, %v152_v17  ;;  %v277_v20 = vpop.f32.mrb[1].mxu1  ;;  %v145_v22 = vadd.f32 %v213_v14, %v144_v18  ;;  %v273_v23 = vpop.f32.mrb[1].mxu0 }
  0xf7   :  { %v155_v25 = vpop.f32.mrb[2].mxu1  ;;  %v147_v26 = vpop.f32.mrb[2].mxu0 }
  0xf8   :  { %v178_v27 = vadd.f32 %v241_v15, %v153_v19  ;;  %v156_v28 = vadd.f32 %v213_v14, %v155_v25  ;;  %v176_v29 = vadd.f32 %v237_v16, %v145_v22  ;;  %v278_v30 = vpop.f32.mrb[3].mxu1  ;;  %v148_v31 = vadd.f32 %v213_v14, %v147_v26  ;;  %v274_v32 = vpop.f32.mrb[3].mxu0 }
  0xfa   :  { %v232_v34 = vpack.c.bf16 %v178_v27, %v178_v27  ;;  %v179_v35 = vadd.f32 %v242_v21, %v156_v28  ;;  %v230_v36 = vpack.c.bf16 %v176_v29, %v176_v29  ;;  %v177_v37 = vadd.f32 %v238_v24, %v148_v31 }
  0xfc   :  { %205 = vst.msk [vmem:[%s406_s4 + $0x8] sm:$0xf] %vm202_vm1, %v232_v34  ;;  %v233_v38 = vpack.c.bf16 %v179_v35, %v179_v35  ;;  %203 = vst.msk [vmem:[%s406_s4] sm:$0xf] %vm202_vm1, %v230_v36  ;;  %v231_v39 = vpack.c.bf16 %v177_v37, %v177_v37 }
  0xfd   :  { %v160_v41 = vpop.f32.mrb[4].mxu1 }
  0xfe   :  { %206 = vst.msk [vmem:[%s406_s4 + $0xc] sm:$0xf] %vm202_vm1, %v233_v38  ;;  %204 = vst.msk [vmem:[%s406_s4 + $0x4] sm:$0xf] %vm202_vm1, %v231_v39  ;;  %v161_v42 = vadd.f32 %v213_v14, %v160_v41  ;;  %v281_v43 = vpop.f32.mrb[5].mxu1 }
  0xff   :  { %v163_v44 = vpop.f32.mrb[6].mxu1 }
 0x100   :  { %v180_v45 = vadd.f32 %v175_v40, %v161_v42  ;;  %v282_v46 = vpop.f32.mrb[7].mxu1 }
 0x102   :  { %v234_v47 = vpack.c.bf16 %v180_v45, %v180_v45 }
 0x104   :  { %208 = vst.msk [vmem:[%s406_s4 + $0x10] sm:$0x1] %vm207_vm2, %v234_v47 }

// kernel: vision_transformer.17
= control target key start
LH: loop header
LB: loop body
LE: loop exit
PB: predicated region body
PF: predicated region fallthrough
CT: control target
= control target key end

     0   :  { %v232_v0 = vmov 0.0   ;;  %vm233_vm0 = vmmov 0   ;;  %vm59_vm1 = vcmask 261120   ;;  %vm161_vm2 = vcmask 257024   ;;  %s304_s1 = inlined_call_operand.vmem [shape: bf16[32,32], index: 1, kind: input, shape index: {}]   ;;  %s305_s0 = inlined_call_operand.vmem [shape: bf16[34,32], index: 0, kind: input, shape index: {}]   ;;  %s306_s3 = inlined_call_operand.vmem [shape: bf16[34,32], index: 3, kind: input, shape index: {}]   ;;  %s307_s2 = inlined_call_operand.vmem [shape: f32[1,32], index: 2, kind: input, shape index: {}]   ;;  %s308_s4 = inlined_call_operand.vmem [shape: bf16[34,32], index: 4, kind: output, shape index: {}]  }
   0x1   :  { %221 = vmatprep.subr.bf16.mxu1 %v232_v0  ;;  %v227_v1 = vld [vmem:[%s304_s1] sm:$0xff]   ;;  %205 = vmatprep.subr.bf16.mxu0 %v232_v0  ;;  %v228_v2 = vld [vmem:[%s304_s1 + $0x8] sm:$0xff]   ;;  %v231_v5 = vld [vmem:[%s305_s0 + $0x10] ss:$0 sps:$4 sm:$0x11]   ;;  %vm166_vm3 = vcmask 253952  }
   0x2   :  { %213 = vmatprep.mubr.msk.bf16.mxu1 %vm233_vm0, %v232_v0  ;;  %209 = vmatprep.mubr.msk.bf16.mxu0 %vm233_vm0, %v232_v0  ;;  %v229_v3 = vld [vmem:[%s305_s0 + $0x8] sm:$0xff]   ;;  %v230_v4 = vld [vmem:[%s305_s0] sm:$0xff]   ;;  %v129_v27 = vld [vmem:[%s306_s3 + $0x10] sm:$0x1] }
   0x3   :  { %223 = vmatpush3.bf16.msra.mxu1 %v227_v1  ;;  %206 = vmatpush3.bf16.msra.mxu0 %v227_v1  ;;  %v199_v6 = vld [vmem:[%s306_s3 + $0x8] sm:$0xff]   ;;  %v192_v7 = vld [vmem:[%s306_s3] sm:$0xff]   ;;  %v134_v34 = vunpack.c.l.bf16 %v129_v27 }
   0x4   :  { %222 = vmatprep.subr.bf16.mxu1 %v232_v0  ;;  %207 = vmatprep.subr.bf16.mxu0 %v232_v0  ;;  %v172_v8 = vld [vmem:[%s307_s2] ss:$0 sm:$0xff]  ;;  %v197_v9 = vunpack.c.l.bf16 %v199_v6  ;;  %v193_v10 = vunpack.c.l.bf16 %v192_v7  ;;  %v198_v15 = vunpack.c.h.bf16 %v199_v6  ;;  %v194_v18 = vunpack.c.h.bf16 %v192_v7 }
   0x7   :  { %224 = vmatpush3.bf16.msra.mxu1 %v228_v2  ;;  %208 = vmatpush3.bf16.msra.mxu0 %v228_v2 }
   0xa   :  { %214 = vmatmul.mubr.msk.bf16.vlgmr.msra.gmra.mrb[0].mxu1 %vm59_vm1, %v229_v3  ;;  %210 = vmatmul.mubr.msk.bf16.vlgmr.msra.gmra.mrb[0].mxu0 %vm59_vm1, %v230_v4 }
   0xb   :  { %217 = vmatprep.mubr.msk.bf16.mxu1 %vm233_vm0, %v232_v0 }
  0x12   :  { %218 = vmatmul.mubr.msk.bf16.gmra.mrb[4].mxu1 %vm59_vm1, %v231_v5 }
  0xdd   :  { %v111_v11 = vpop.f32.mrb[0].mxu1  ;;  %v103_v12 = vpop.f32.mrb[0].mxu0 }
  0xde   :  { %v112_v13 = vadd.f32 %v172_v8, %v111_v11  ;;  %v215_v14 = vpop.f32.mrb[1].mxu1  ;;  %v104_v16 = vadd.f32 %v172_v8, %v103_v12  ;;  %v211_v17 = vpop.f32.mrb[1].mxu0 }
  0xdf   :  { %v114_v19 = vpop.f32.mrb[2].mxu1  ;;  %v106_v20 = vpop.f32.mrb[2].mxu0 }
  0xe0   :  { %v137_v21 = vadd.f32 %v197_v9, %v112_v13  ;;  %v115_v22 = vadd.f32 %v172_v8, %v114_v19  ;;  %v135_v23 = vadd.f32 %v193_v10, %v104_v16  ;;  %v216_v24 = vpop.f32.mrb[3].mxu1  ;;  %v107_v25 = vadd.f32 %v172_v8, %v106_v20  ;;  %v212_v26 = vpop.f32.mrb[3].mxu0 }
  0xe2   :  { %v188_v28 = vpack.c.bf16 %v137_v21, %v137_v21  ;;  %v138_v29 = vadd.f32 %v198_v15, %v115_v22  ;;  %v186_v30 = vpack.c.bf16 %v135_v23, %v135_v23  ;;  %v136_v31 = vadd.f32 %v194_v18, %v107_v25 }
  0xe4   :  { %164 = vst.msk [vmem:[%s308_s4 + $0x8] sm:$0xf] %vm161_vm2, %v188_v28  ;;  %v189_v32 = vpack.c.bf16 %v138_v29, %v138_v29  ;;  %162 = vst.msk [vmem:[%s308_s4] sm:$0xf] %vm161_vm2, %v186_v30  ;;  %v187_v33 = vpack.c.bf16 %v136_v31, %v136_v31 }
  0xe5   :  { %v119_v35 = vpop.f32.mrb[4].mxu1 }
  0xe6   :  { %165 = vst.msk [vmem:[%s308_s4 + $0xc] sm:$0xf] %vm161_vm2, %v189_v32  ;;  %163 = vst.msk [vmem:[%s308_s4 + $0x4] sm:$0xf] %vm161_vm2, %v187_v33  ;;  %v120_v36 = vadd.f32 %v172_v8, %v119_v35  ;;  %v219_v37 = vpop.f32.mrb[5].mxu1 }
  0xe7   :  { %v122_v38 = vpop.f32.mrb[6].mxu1 }
  0xe8   :  { %v139_v39 = vadd.f32 %v134_v34, %v120_v36  ;;  %v220_v40 = vpop.f32.mrb[7].mxu1 }
  0xea   :  { %v190_v41 = vpack.c.bf16 %v139_v39, %v139_v39 }
  0xec   :  { %167 = vst.msk [vmem:[%s308_s4 + $0x10] sm:$0x1] %vm166_vm3, %v190_v41 }

// kernel: vision_transformer.25
= control target key start
LH: loop header
LB: loop body
LE: loop exit
PB: predicated region body
PF: predicated region fallthrough
CT: control target
= control target key end

     0   :  { %vm24_vm0 = vcmask 254976   ;;  %v148_v9 = vmov 0.0   ;;  %vm149_vm1 = vmmov 0   ;;  %vm56_vm2 = vcmask 253952   ;;  %s193_s0 = inlined_call_operand.vmem [shape: bf16[2,32], index: 0, kind: input, shape index: {}]   ;;  %s194_s1 = inlined_call_operand.vmem [shape: bf16[32,16], index: 1, kind: input, shape index: {}]   ;;  %s195_s2 = inlined_call_operand.vmem [shape: f32[1,32], index: 2, kind: input, shape index: {}]   ;;  %s196_s3 = inlined_call_operand.vmem [shape: f32[1,32], index: 3, kind: input, shape index: {}]   ;;  %s197_s4 = inlined_call_operand.vmem [shape: bf16[2,16], index: 4, kind: output, shape index: {}]  }
   0x1   :  { %v22_v0 = vld [vmem:[%s193_s0] sm:$0x1]  ;;  %134 = vmatprep.subr.bf16.mxu0 %v148_v9  ;;  %v145_v10 = vld [vmem:[%s194_s1 + $0x8] sm:$0xff]   ;;  %138 = vmatprep.mubr.msk.bf16.mxu0 %vm149_vm1, %v148_v9  ;;  %vm75_vm3 = vcmask 261120   ;;  %vm120_vm4 = vcmask 122880  }
   0x2   :  { %v23_v1 = vunpack.c.l.bf16 %v22_v0  ;;  %v144_v8 = vld [vmem:[%s194_s1] sm:$0xff]  }
   0x3   :  { %135 = vmatpush3.bf16.msra.mxu0 %v144_v8  ;;  %v126_v15 = vld [vmem:[%s195_s2] ss:$0 sm:$0xff] }
   0x4   :  { %v25_v2 = vsel %vm24_vm0, %v23_v1, 0.0  ;;  %136 = vmatprep.subr.bf16.mxu0 %v148_v9  ;;  %v127_v17 = vld [vmem:[%s196_s3] ss:$0 sm:$0xff] }
   0x5   :  { %26 = vadd.xlane.f32.xlu0 %v25_v2 }
   0x7   :  { %137 = vmatpush3.bf16.msra.mxu0 %v145_v10 }
  0x92   :  { %v27_v3 = vpop.xlane.xlu0 %26 }
  0x93   :  { %v29_v4 = vmul.f32 0.03125, %v27_v3 }
  0x95   :  { %v30_v5 = vsub.f32 %v23_v1, %v29_v4 }
  0x97   :  { %v31_v6 = vmul.f32 %v30_v5, %v30_v5 }
  0x99   :  { %v32_v7 = vsel %vm24_vm0, %v31_v6, 0.0 }
  0x9a   :  { %33 = vadd.xlane.f32.xlu0 %v32_v7 }
 0x127   :  { %v34_v11 = vpop.xlane.xlu0 %33 }
 0x128   :  { %v35_v12 = vmul.f32 0.03125, %v34_v11 }
 0x12a   :  { %v36_v13 = vadd.f32 1e-05, %v35_v12 }
 0x12c   :  { %146 = vrsqrt.f32 %v36_v13 }
 0x136   :  { %v147_v14 = vpop.eup %146 }
 0x137   :  { %v38_v16 = vmul.f32 %v147_v14, %v30_v5 }
 0x139   :  { %v46_v18 = vmul.f32 %v126_v15, %v38_v16 }
 0x13b   :  { %v54_v19 = vadd.f32 %v127_v17, %v46_v18 }
 0x13d   :  { %v55_v20 = vpack.c.bf16 %v54_v19, %v54_v19 }
 0x13f   :  { %57 = vst.msk [vmem:[#allocation2] sm:$0x1] %vm56_vm2, %v55_v20 }
 0x146   :  { %v58_v21 = vld [vmem:[#allocation2] sm:$0x1] }
 0x147   :  { %139 = vmatmul.mubr.msk.bf16.vlgmr.msra.gmra.mrb[0].mxu0 %vm75_vm3, %v58_v21 }
 0x21a   :  { %v113_v22 = vpop.f32.mrb[0].mxu0 }
 0x21b   :  { %v119_v23 = vpack.c.bf16 %v113_v22, %v113_v22  ;;  %v140_v24 = vpop.f32.mrb[1].mxu0 }
 0x21c   :  { %v116_v25 = vpop.f32.mrb[2].mxu0 }
 0x21d   :  { %121 = vst.msk [vmem:[%s197_s4] sm:$0x1] %vm120_vm4, %v119_v23  ;;  %v141_v26 = vpop.f32.mrb[3].mxu0 }

</bundles_post_ra>
